<compile_context>
chip_gen: v7x
topology: tpu7x:2x2x1
jax: 0.10.0
libtpu: 0.0.40
codegen_flags: <defaults>
</compile_context>

<pallas_src>
import jax
import jax.numpy as jnp
from jax.experimental import pallas as pl
from jax.experimental.pallas import tpu as pltpu

# ----------------------------- small config ---------------------------------
VOCAB = 64              # vocab_size
VOCAB_PAD = 128         # lane-padded LM-head width (sliced back to VOCAB)
EMBED = 48              # embedding_dim
HIDDEN = 96             # hidden_dim (conv1d(k=1) channels)
NUM_HEADS = 3           # ConvoWizard default num_heads=3
HEAD_DIM = EMBED // NUM_HEADS
NUM_LAYERS = 2          # small stand-in for num_encoder_layers=6
MAX_LEN = 16            # max_length (small)
NUM_TOKEN_TYPES = 2
PADDING_IDX = 0
LN_EPS = 1e-5
ATTN_SCALE = 1.0 / (HEAD_DIM ** 0.5)


# ----------------------------- fused Pallas kernel ---------------------------
def _convo_wizard_fused_kernel(
        emb_ref, mask_ref, emb_g_ref, emb_b_ref,
        w_qkv_ref, b_qkv_ref, w_o_ref, b_o_ref, ln1_g_ref, ln1_b_ref,
        w1_ref, b1_ref, w2_ref, b2_ref, ln2_g_ref, ln2_b_ref,
        lm_w_ref, o_ref):
    b = pl.program_id(0)
    T = MAX_LEN

    def layer_norm(v, g, beta):
        mean = jnp.mean(v, axis=-1, keepdims=True)
        cen = v - mean
        var = jnp.mean(cen * cen, axis=-1, keepdims=True)
        return cen * jax.lax.rsqrt(var + LN_EPS) * g + beta

    # embeddings (token+pos+type, gathered in the wrapper) -> LayerNorm
    x = layer_norm(emb_ref[0], emb_g_ref[...], emb_b_ref[...])        # (T, E)

    # additive attention bias built in-kernel: causal (iota) + key padding.
    # attention_mask convention: nonzero == padded key (default zeros mask
    # nothing, matching torch.zeros_like default in the original module).
    row = jax.lax.broadcasted_iota(jnp.int32, (T, T), 0)
    col = jax.lax.broadcasted_iota(jnp.int32, (T, T), 1)
    pad = mask_ref[pl.ds(b, 1), :]                                    # (1, T)
    bias = (jnp.where(row >= col, 0.0, -1e9)
            + jnp.where(pad != 0.0, -1e9, 0.0))                       # (T, T)

    for l in range(NUM_LAYERS):       # unrolled: activations stay in vregs
        # ---------------- causal multi-head self-attention ----------------
        qkv = jnp.dot(x, w_qkv_ref[l],
                      preferred_element_type=jnp.float32) + b_qkv_ref[l]
        w_o_l = w_o_ref[l]                                            # (E, E)
        attn = jnp.zeros((T, EMBED), jnp.float32)
        for h in range(NUM_HEADS):
            lo = h * HEAD_DIM
            qh = qkv[:, lo:lo + HEAD_DIM] * ATTN_SCALE                # (T, hd)
            kh = qkv[:, EMBED + lo:EMBED + lo + HEAD_DIM]
            vh = qkv[:, 2 * EMBED + lo:2 * EMBED + lo + HEAD_DIM]
            # NT matmul (contract last dims) -- no explicit k.T
            s = jax.lax.dot_general(qh, kh, (((1,), (1,)), ((), ())),
                                    preferred_element_type=jnp.float32) + bias
            m = jnp.max(s, axis=-1, keepdims=True)
            p = jnp.exp(s - m)
            denom = jnp.sum(p, axis=-1, keepdims=True)
            p = p * pl.reciprocal(denom, approx=True)
            o_h = jnp.dot(p, vh, preferred_element_type=jnp.float32)  # (T, hd)
            # head-merge fused with the output projection: sum_h o_h @ W_o[h]
            attn = attn + jnp.dot(o_h, w_o_l[lo:lo + HEAD_DIM, :],
                                  preferred_element_type=jnp.float32)
        attn = attn + b_o_ref[l]
        x = layer_norm(x + attn, ln1_g_ref[l], ln1_b_ref[l])

        # --------- conv1d(k=1) -> ReLU -> conv1d(k=1) feed-forward ---------
        h1 = jnp.maximum(
            jnp.dot(x, w1_ref[l], preferred_element_type=jnp.float32)
            + b1_ref[l], 0.0)
        ff = jnp.dot(h1, w2_ref[l],
                     preferred_element_type=jnp.float32) + b2_ref[l]
        x = layer_norm(x + ff, ln2_g_ref[l], ln2_b_ref[l])

    # tied LM head: weight pre-transposed + lane-padded to 128 at init, so the
    # only HBM store of the kernel is lane-dense (unmasked vst).
    o_ref[0] = jnp.dot(x, lm_w_ref[...],
                       preferred_element_type=jnp.float32).astype(o_ref.dtype)


def fused_forward(params, emb, attention_mask):
    B, T, E = emb.shape

    def replicated(shape):
        return pl.BlockSpec(shape, lambda b: (0,) * len(shape))

    in_specs = [
        pl.BlockSpec((1, T, E), lambda b: (b, 0, 0)),        # per-batch embeddings
        replicated((B, T)),                                  # key-padding mask
        replicated((1, EMBED)), replicated((1, EMBED)),      # embedding LN
        replicated((NUM_LAYERS, EMBED, 3 * EMBED)),          # W_qkv (stacked)
        replicated((NUM_LAYERS, 1, 3 * EMBED)),
        replicated((NUM_LAYERS, EMBED, EMBED)),              # W_o
        replicated((NUM_LAYERS, 1, EMBED)),
        replicated((NUM_LAYERS, 1, EMBED)),                  # LN1 gamma/beta
        replicated((NUM_LAYERS, 1, EMBED)),
        replicated((NUM_LAYERS, EMBED, HIDDEN)),             # FFN W1
        replicated((NUM_LAYERS, 1, HIDDEN)),
        replicated((NUM_LAYERS, HIDDEN, EMBED)),             # FFN W2
        replicated((NUM_LAYERS, 1, EMBED)),
        replicated((NUM_LAYERS, 1, EMBED)),                  # LN2 gamma/beta
        replicated((NUM_LAYERS, 1, EMBED)),
        replicated((EMBED, VOCAB_PAD)),                      # tied LM head (E, 128)
    ]
    return pl.pallas_call(
        _convo_wizard_fused_kernel,
        out_shape=jax.ShapeDtypeStruct((B, T, VOCAB_PAD), jnp.float32),
        grid=(B,),
        in_specs=in_specs,
        out_specs=pl.BlockSpec((1, T, VOCAB_PAD), lambda b: (b, 0, 0)),
        compiler_params=pltpu.CompilerParams(
            dimension_semantics=("parallel",)),
    )(emb, attention_mask.astype(jnp.float32),
      params["emb_ln_g"], params["emb_ln_b"],
      params["w_qkv"], params["b_qkv"], params["w_o"], params["b_o"],
      params["ln1_g"], params["ln1_b"],
      params["w1"], params["b1"], params["w2"], params["b2"],
      params["ln2_g"], params["ln2_b"],
      params["lm_head_w"])


# ----------------------------- model glue ------------------------------------
def init_params(key):
    keys = jax.random.split(key, 8)

    def normal(k, shape, scale=0.02):
        return scale * jax.random.normal(k, shape, dtype=jnp.float32)

    tok = normal(keys[0], (VOCAB, EMBED)).at[PADDING_IDX].set(0.0)
    # tied LM head: transpose once, lane-pad to 128 (cols VOCAB..127 are zero)
    lm_w = jnp.zeros((EMBED, VOCAB_PAD), jnp.float32).at[:, :VOCAB].set(tok.T)

    return dict(
        token_embedding=tok,
        position_embedding=normal(keys[1], (MAX_LEN, EMBED)),
        token_type_embedding=normal(keys[2], (NUM_TOKEN_TYPES, EMBED)),
        emb_ln_g=jnp.ones((1, EMBED), jnp.float32),
        emb_ln_b=jnp.zeros((1, EMBED), jnp.float32),
        w_qkv=normal(keys[3], (NUM_LAYERS, EMBED, 3 * EMBED)),
        b_qkv=jnp.zeros((NUM_LAYERS, 1, 3 * EMBED), jnp.float32),
        w_o=normal(keys[4], (NUM_LAYERS, EMBED, EMBED)),
        b_o=jnp.zeros((NUM_LAYERS, 1, EMBED), jnp.float32),
        ln1_g=jnp.ones((NUM_LAYERS, 1, EMBED), jnp.float32),
        ln1_b=jnp.zeros((NUM_LAYERS, 1, EMBED), jnp.float32),
        w1=normal(keys[5], (NUM_LAYERS, EMBED, HIDDEN)),
        b1=jnp.zeros((NUM_LAYERS, 1, HIDDEN), jnp.float32),
        w2=normal(keys[6], (NUM_LAYERS, HIDDEN, EMBED)),
        b2=jnp.zeros((NUM_LAYERS, 1, EMBED), jnp.float32),
        ln2_g=jnp.ones((NUM_LAYERS, 1, EMBED), jnp.float32),
        ln2_b=jnp.zeros((NUM_LAYERS, 1, EMBED), jnp.float32),
        lm_head_w=lm_w,
    )


def convo_wizard_forward(params, input_ids, position_ids, token_type_ids,
                         attention_mask=None, make_predictions=False):
    if attention_mask is None:
        attention_mask = jnp.zeros_like(input_ids)

    # embedding gathers stay in JAX glue (a tiny gather; no efficient Pallas
    # equivalent is warranted at this size)
    emb = (params["token_embedding"][input_ids]
           + params["position_embedding"][position_ids]
           + params["token_type_embedding"][token_type_ids]).astype(jnp.float32)

    lm_padded = fused_forward(params, emb, attention_mask)
    lm_output = lm_padded[..., :VOCAB]

    classifier_output = None
    # TODO(synk): RecurrentClassifierHead (RNN over sequence) has no clean
    # Pallas equivalent here; default forward uses make_predictions=False -> None.
    return lm_output, classifier_output


# ----------------------------- main -------------------------------------------
if __name__ == "__main__":
    key = jax.random.PRNGKey(0)
    params = init_params(jax.random.PRNGKey(42))

    B, T = 2, MAX_LEN
    k1, k2 = jax.random.split(key)
    input_ids = jax.random.randint(k1, (B, T), 3, VOCAB)
    position_ids = jnp.broadcast_to(jnp.arange(T), (B, T))
    token_type_ids = jax.random.randint(k2, (B, T), 0, NUM_TOKEN_TYPES)
    attention_mask = jnp.zeros((B, T), jnp.int32)   # matches torch.zeros_like default

    lm_output, classifier_output = convo_wizard_forward(
        params, input_ids, position_ids, token_type_ids, attention_mask,
        make_predictions=False)
    lm_output = jax.block_until_ready(lm_output)

    assert lm_output.shape == (B, T, VOCAB)
    assert bool(jnp.all(jnp.isfinite(lm_output)))
    assert classifier_output is None
    print("KERNEL_OK")
</pallas_src>

<mosaic_0001>
module attributes {stable_mosaic.version = 11 : i64} {
  func.func @_convo_wizard_fused_kernel(%arg0: i32, %arg1: memref<1x16x48xf32, #tpu.memory_space<vmem>>, %arg2: memref<2x16xf32, #tpu.memory_space<vmem>>, %arg3: memref<1x48xf32, #tpu.memory_space<vmem>>, %arg4: memref<1x48xf32, #tpu.memory_space<vmem>>, %arg5: memref<2x48x144xf32, #tpu.memory_space<vmem>>, %arg6: memref<2x1x144xf32, #tpu.memory_space<vmem>>, %arg7: memref<2x48x48xf32, #tpu.memory_space<vmem>>, %arg8: memref<2x1x48xf32, #tpu.memory_space<vmem>>, %arg9: memref<2x1x48xf32, #tpu.memory_space<vmem>>, %arg10: memref<2x1x48xf32, #tpu.memory_space<vmem>>, %arg11: memref<2x48x96xf32, #tpu.memory_space<vmem>>, %arg12: memref<2x1x96xf32, #tpu.memory_space<vmem>>, %arg13: memref<2x96x48xf32, #tpu.memory_space<vmem>>, %arg14: memref<2x1x48xf32, #tpu.memory_space<vmem>>, %arg15: memref<2x1x48xf32, #tpu.memory_space<vmem>>, %arg16: memref<2x1x48xf32, #tpu.memory_space<vmem>>, %arg17: memref<48x128xf32, #tpu.memory_space<vmem>>, %arg18: memref<1x16x128xf32, #tpu.memory_space<vmem>>) attributes {dimension_semantics = [#tpu.dimension_semantics<parallel>], iteration_bounds = array<i64: 2>, scalar_prefetch = 0 : i64, scratch_operands = 0 : i64, tpu.core_type = #tpu.core_type<tc>, window_params = [{transform_indices = @transform_0, window_bounds = array<i64: 1, 16, 48>}, {pipeline_mode = #tpu.pipeline_mode<synchronous>, transform_indices = @transform_1, window_bounds = array<i64: 2, 16>}, {pipeline_mode = #tpu.pipeline_mode<synchronous>, transform_indices = @transform_2, window_bounds = array<i64: 1, 48>}, {pipeline_mode = #tpu.pipeline_mode<synchronous>, transform_indices = @transform_3, window_bounds = array<i64: 1, 48>}, {pipeline_mode = #tpu.pipeline_mode<synchronous>, transform_indices = @transform_4, window_bounds = array<i64: 2, 48, 144>}, {pipeline_mode = #tpu.pipeline_mode<synchronous>, transform_indices = @transform_5, window_bounds = array<i64: 2, 1, 144>}, {pipeline_mode = #tpu.pipeline_mode<synchronous>, transform_indices = @transform_6, window_bounds = array<i64: 2, 48, 48>}, {pipeline_mode = #tpu.pipeline_mode<synchronous>, transform_indices = @transform_7, window_bounds = array<i64: 2, 1, 48>}, {pipeline_mode = #tpu.pipeline_mode<synchronous>, transform_indices = @transform_8, window_bounds = array<i64: 2, 1, 48>}, {pipeline_mode = #tpu.pipeline_mode<synchronous>, transform_indices = @transform_9, window_bounds = array<i64: 2, 1, 48>}, {pipeline_mode = #tpu.pipeline_mode<synchronous>, transform_indices = @transform_10, window_bounds = array<i64: 2, 48, 96>}, {pipeline_mode = #tpu.pipeline_mode<synchronous>, transform_indices = @transform_11, window_bounds = array<i64: 2, 1, 96>}, {pipeline_mode = #tpu.pipeline_mode<synchronous>, transform_indices = @transform_12, window_bounds = array<i64: 2, 96, 48>}, {pipeline_mode = #tpu.pipeline_mode<synchronous>, transform_indices = @transform_13, window_bounds = array<i64: 2, 1, 48>}, {pipeline_mode = #tpu.pipeline_mode<synchronous>, transform_indices = @transform_14, window_bounds = array<i64: 2, 1, 48>}, {pipeline_mode = #tpu.pipeline_mode<synchronous>, transform_indices = @transform_15, window_bounds = array<i64: 2, 1, 48>}, {pipeline_mode = #tpu.pipeline_mode<synchronous>, transform_indices = @transform_16, window_bounds = array<i64: 48, 128>}, {transform_indices = @transform_17, window_bounds = array<i64: 1, 16, 128>}]} {
    %c0 = arith.constant 0 : index
    %c0_0 = arith.constant 0 : index
    %c0_1 = arith.constant 0 : index
    %0 = vector.load %arg1[%c0, %c0_0, %c0_1] : memref<1x16x48xf32, #tpu.memory_space<vmem>>, vector<1x16x48xf32>
    %1 = vector.shape_cast %0 : vector<1x16x48xf32> to vector<16x48xf32>
    %c0_2 = arith.constant 0 : index
    %c0_3 = arith.constant 0 : index
    %2 = vector.load %arg3[%c0_2, %c0_3] : memref<1x48xf32, #tpu.memory_space<vmem>>, vector<1x48xf32>
    %c0_4 = arith.constant 0 : index
    %c0_5 = arith.constant 0 : index
    %3 = vector.load %arg4[%c0_4, %c0_5] : memref<1x48xf32, #tpu.memory_space<vmem>>, vector<1x48xf32>
    %cst = arith.constant dense<0.000000e+00> : vector<16xf32>
    %4 = vector.multi_reduction <add>, %1, %cst [1] : vector<16x48xf32> to vector<16xf32>
    %5 = vector.shape_cast %4 : vector<16xf32> to vector<16x1xf32>
    %cst_6 = arith.constant 4.800000e+01 : f32
    %6 = vector.broadcast %cst_6 : f32 to vector<16x1xf32>
    %7 = arith.divf %5, %6 : vector<16x1xf32>
    %8 = vector.broadcast %7 : vector<16x1xf32> to vector<16x48xf32>
    %9 = arith.subf %1, %8 : vector<16x48xf32>
    %10 = arith.mulf %9, %9 : vector<16x48xf32>
    %cst_7 = arith.constant dense<0.000000e+00> : vector<16xf32>
    %11 = vector.multi_reduction <add>, %10, %cst_7 [1] : vector<16x48xf32> to vector<16xf32>
    %12 = vector.shape_cast %11 : vector<16xf32> to vector<16x1xf32>
    %cst_8 = arith.constant 4.800000e+01 : f32
    %13 = vector.broadcast %cst_8 : f32 to vector<16x1xf32>
    %14 = arith.divf %12, %13 : vector<16x1xf32>
    %cst_9 = arith.constant 9.99999974E-6 : f32
    %15 = vector.broadcast %cst_9 : f32 to vector<16x1xf32>
    %16 = arith.addf %14, %15 : vector<16x1xf32>
    %17 = math.rsqrt %16 : vector<16x1xf32>
    %18 = vector.broadcast %17 : vector<16x1xf32> to vector<16x48xf32>
    %19 = arith.mulf %9, %18 : vector<16x48xf32>
    %20 = vector.broadcast %2 : vector<1x48xf32> to vector<16x48xf32>
    %21 = arith.mulf %19, %20 : vector<16x48xf32>
    %22 = vector.broadcast %3 : vector<1x48xf32> to vector<16x48xf32>
    %23 = arith.addf %21, %22 : vector<16x48xf32>
    %24 = tpu.iota {dimensions = array<i32: 0>} : vector<16x16xi32>
    %25 = tpu.iota {dimensions = array<i32: 1>} : vector<16x16xi32>
    %26 = arith.index_cast %arg0 : i32 to index
    %c0_10 = arith.constant 0 : index
    %27 = vector.load %arg2[%26, %c0_10] : memref<2x16xf32, #tpu.memory_space<vmem>>, vector<1x16xf32>
    %28 = arith.cmpi sge, %24, %25 : vector<16x16xi32>
    %cst_11 = arith.constant 0.000000e+00 : f32
    %cst_12 = arith.constant -1.000000e+09 : f32
    %29 = vector.broadcast %cst_11 : f32 to vector<16x16xf32>
    %30 = vector.broadcast %cst_12 : f32 to vector<16x16xf32>
    %31 = arith.select %28, %29, %30 : vector<16x16xi1>, vector<16x16xf32>
    %cst_13 = arith.constant 0.000000e+00 : f32
    %32 = vector.broadcast %cst_13 : f32 to vector<1x16xf32>
    %33 = arith.cmpf one, %27, %32 : vector<1x16xf32>
    %cst_14 = arith.constant -1.000000e+09 : f32
    %cst_15 = arith.constant 0.000000e+00 : f32
    %34 = vector.broadcast %cst_14 : f32 to vector<1x16xf32>
    %35 = vector.broadcast %cst_15 : f32 to vector<1x16xf32>
    %36 = arith.select %33, %34, %35 : vector<1x16xi1>, vector<1x16xf32>
    %37 = vector.broadcast %36 : vector<1x16xf32> to vector<16x16xf32>
    %38 = arith.addf %31, %37 : vector<16x16xf32>
    %c0_16 = arith.constant 0 : index
    %c0_17 = arith.constant 0 : index
    %c0_18 = arith.constant 0 : index
    %39 = vector.load %arg5[%c0_16, %c0_17, %c0_18] : memref<2x48x144xf32, #tpu.memory_space<vmem>>, vector<1x48x144xf32>
    %40 = vector.shape_cast %39 : vector<1x48x144xf32> to vector<48x144xf32>
    %cst_19 = arith.constant dense<0.000000e+00> : vector<16x144xf32>
    %41 = tpu.matmul %23, %40, %cst_19 {dimension_numbers = #tpu.dot_dimension_numbers<[1], [0], [0], [1], [0, 0, 1, 1], [], []>} : vector<16x48xf32>, vector<48x144xf32>, vector<16x144xf32> -> vector<16x144xf32>
    %c0_20 = arith.constant 0 : index
    %c0_21 = arith.constant 0 : index
    %c0_22 = arith.constant 0 : index
    %42 = vector.load %arg6[%c0_20, %c0_21, %c0_22] : memref<2x1x144xf32, #tpu.memory_space<vmem>>, vector<1x1x144xf32>
    %43 = vector.shape_cast %42 : vector<1x1x144xf32> to vector<1x144xf32>
    %44 = vector.broadcast %43 : vector<1x144xf32> to vector<16x144xf32>
    %45 = arith.addf %41, %44 : vector<16x144xf32>
    %c0_23 = arith.constant 0 : index
    %c0_24 = arith.constant 0 : index
    %c0_25 = arith.constant 0 : index
    %46 = vector.load %arg7[%c0_23, %c0_24, %c0_25] : memref<2x48x48xf32, #tpu.memory_space<vmem>>, vector<1x48x48xf32>
    %47 = vector.shape_cast %46 : vector<1x48x48xf32> to vector<48x48xf32>
    %cst_26 = arith.constant 0.000000e+00 : f32
    %48 = vector.broadcast %cst_26 : f32 to vector<16x48xf32>
    %49 = vector.extract_strided_slice %45 {offsets = [0, 0], sizes = [16, 16], strides = [1, 1]} : vector<16x144xf32> to vector<16x16xf32>
    %cst_27 = arith.constant 2.500000e-01 : f32
    %50 = vector.broadcast %cst_27 : f32 to vector<16x16xf32>
    %51 = arith.mulf %49, %50 : vector<16x16xf32>
    %52 = vector.extract_strided_slice %45 {offsets = [0, 48], sizes = [16, 16], strides = [1, 1]} : vector<16x144xf32> to vector<16x16xf32>
    %53 = vector.extract_strided_slice %45 {offsets = [0, 96], sizes = [16, 16], strides = [1, 1]} : vector<16x144xf32> to vector<16x16xf32>
    %cst_28 = arith.constant dense<0.000000e+00> : vector<16x16xf32>
    %54 = tpu.matmul %51, %52, %cst_28 {dimension_numbers = #tpu.dot_dimension_numbers<[1], [1], [0], [0], [0, 0, 1, 0], [], []>} : vector<16x16xf32>, vector<16x16xf32>, vector<16x16xf32> -> vector<16x16xf32>
    %55 = arith.addf %54, %38 : vector<16x16xf32>
    %cst_29 = arith.constant dense<0xFF800000> : vector<16xf32>
    %56 = vector.multi_reduction <maximumf>, %55, %cst_29 [1] : vector<16x16xf32> to vector<16xf32>
    %57 = vector.shape_cast %56 : vector<16xf32> to vector<16x1xf32>
    %58 = vector.broadcast %57 : vector<16x1xf32> to vector<16x16xf32>
    %59 = arith.subf %55, %58 : vector<16x16xf32>
    %60 = math.exp %59 : vector<16x16xf32>
    %cst_30 = arith.constant dense<0.000000e+00> : vector<16xf32>
    %61 = vector.multi_reduction <add>, %60, %cst_30 [1] : vector<16x16xf32> to vector<16xf32>
    %62 = vector.shape_cast %61 : vector<16xf32> to vector<16x1xf32>
    %63 = tpu.reciprocal %62 {approx = true} : vector<16x1xf32> -> vector<16x1xf32>
    %64 = vector.broadcast %63 : vector<16x1xf32> to vector<16x16xf32>
    %65 = arith.mulf %60, %64 : vector<16x16xf32>
    %cst_31 = arith.constant dense<0.000000e+00> : vector<16x16xf32>
    %66 = tpu.matmul %65, %53, %cst_31 {dimension_numbers = #tpu.dot_dimension_numbers<[1], [0], [0], [1], [0, 0, 1, 1], [], []>} : vector<16x16xf32>, vector<16x16xf32>, vector<16x16xf32> -> vector<16x16xf32>
    %67 = vector.extract_strided_slice %47 {offsets = [0, 0], sizes = [16, 48], strides = [1, 1]} : vector<48x48xf32> to vector<16x48xf32>
    %cst_32 = arith.constant dense<0.000000e+00> : vector<16x48xf32>
    %68 = tpu.matmul %66, %67, %cst_32 {dimension_numbers = #tpu.dot_dimension_numbers<[1], [0], [0], [1], [0, 0, 1, 1], [], []>} : vector<16x16xf32>, vector<16x48xf32>, vector<16x48xf32> -> vector<16x48xf32>
    %69 = arith.addf %48, %68 : vector<16x48xf32>
    %70 = vector.extract_strided_slice %45 {offsets = [0, 16], sizes = [16, 16], strides = [1, 1]} : vector<16x144xf32> to vector<16x16xf32>
    %cst_33 = arith.constant 2.500000e-01 : f32
    %71 = vector.broadcast %cst_33 : f32 to vector<16x16xf32>
    %72 = arith.mulf %70, %71 : vector<16x16xf32>
    %73 = vector.extract_strided_slice %45 {offsets = [0, 64], sizes = [16, 16], strides = [1, 1]} : vector<16x144xf32> to vector<16x16xf32>
    %74 = vector.extract_strided_slice %45 {offsets = [0, 112], sizes = [16, 16], strides = [1, 1]} : vector<16x144xf32> to vector<16x16xf32>
    %cst_34 = arith.constant dense<0.000000e+00> : vector<16x16xf32>
    %75 = tpu.matmul %72, %73, %cst_34 {dimension_numbers = #tpu.dot_dimension_numbers<[1], [1], [0], [0], [0, 0, 1, 0], [], []>} : vector<16x16xf32>, vector<16x16xf32>, vector<16x16xf32> -> vector<16x16xf32>
    %76 = arith.addf %75, %38 : vector<16x16xf32>
    %cst_35 = arith.constant dense<0xFF800000> : vector<16xf32>
    %77 = vector.multi_reduction <maximumf>, %76, %cst_35 [1] : vector<16x16xf32> to vector<16xf32>
    %78 = vector.shape_cast %77 : vector<16xf32> to vector<16x1xf32>
    %79 = vector.broadcast %78 : vector<16x1xf32> to vector<16x16xf32>
    %80 = arith.subf %76, %79 : vector<16x16xf32>
    %81 = math.exp %80 : vector<16x16xf32>
    %cst_36 = arith.constant dense<0.000000e+00> : vector<16xf32>
    %82 = vector.multi_reduction <add>, %81, %cst_36 [1] : vector<16x16xf32> to vector<16xf32>
    %83 = vector.shape_cast %82 : vector<16xf32> to vector<16x1xf32>
    %84 = tpu.reciprocal %83 {approx = true} : vector<16x1xf32> -> vector<16x1xf32>
    %85 = vector.broadcast %84 : vector<16x1xf32> to vector<16x16xf32>
    %86 = arith.mulf %81, %85 : vector<16x16xf32>
    %cst_37 = arith.constant dense<0.000000e+00> : vector<16x16xf32>
    %87 = tpu.matmul %86, %74, %cst_37 {dimension_numbers = #tpu.dot_dimension_numbers<[1], [0], [0], [1], [0, 0, 1, 1], [], []>} : vector<16x16xf32>, vector<16x16xf32>, vector<16x16xf32> -> vector<16x16xf32>
    %88 = vector.extract_strided_slice %47 {offsets = [16, 0], sizes = [16, 48], strides = [1, 1]} : vector<48x48xf32> to vector<16x48xf32>
    %cst_38 = arith.constant dense<0.000000e+00> : vector<16x48xf32>
    %89 = tpu.matmul %87, %88, %cst_38 {dimension_numbers = #tpu.dot_dimension_numbers<[1], [0], [0], [1], [0, 0, 1, 1], [], []>} : vector<16x16xf32>, vector<16x48xf32>, vector<16x48xf32> -> vector<16x48xf32>
    %90 = arith.addf %69, %89 : vector<16x48xf32>
    %91 = vector.extract_strided_slice %45 {offsets = [0, 32], sizes = [16, 16], strides = [1, 1]} : vector<16x144xf32> to vector<16x16xf32>
    %cst_39 = arith.constant 2.500000e-01 : f32
    %92 = vector.broadcast %cst_39 : f32 to vector<16x16xf32>
    %93 = arith.mulf %91, %92 : vector<16x16xf32>
    %94 = vector.extract_strided_slice %45 {offsets = [0, 80], sizes = [16, 16], strides = [1, 1]} : vector<16x144xf32> to vector<16x16xf32>
    %95 = vector.extract_strided_slice %45 {offsets = [0, 128], sizes = [16, 16], strides = [1, 1]} : vector<16x144xf32> to vector<16x16xf32>
    %cst_40 = arith.constant dense<0.000000e+00> : vector<16x16xf32>
    %96 = tpu.matmul %93, %94, %cst_40 {dimension_numbers = #tpu.dot_dimension_numbers<[1], [1], [0], [0], [0, 0, 1, 0], [], []>} : vector<16x16xf32>, vector<16x16xf32>, vector<16x16xf32> -> vector<16x16xf32>
    %97 = arith.addf %96, %38 : vector<16x16xf32>
    %cst_41 = arith.constant dense<0xFF800000> : vector<16xf32>
    %98 = vector.multi_reduction <maximumf>, %97, %cst_41 [1] : vector<16x16xf32> to vector<16xf32>
    %99 = vector.shape_cast %98 : vector<16xf32> to vector<16x1xf32>
    %100 = vector.broadcast %99 : vector<16x1xf32> to vector<16x16xf32>
    %101 = arith.subf %97, %100 : vector<16x16xf32>
    %102 = math.exp %101 : vector<16x16xf32>
    %cst_42 = arith.constant dense<0.000000e+00> : vector<16xf32>
    %103 = vector.multi_reduction <add>, %102, %cst_42 [1] : vector<16x16xf32> to vector<16xf32>
    %104 = vector.shape_cast %103 : vector<16xf32> to vector<16x1xf32>
    %105 = tpu.reciprocal %104 {approx = true} : vector<16x1xf32> -> vector<16x1xf32>
    %106 = vector.broadcast %105 : vector<16x1xf32> to vector<16x16xf32>
    %107 = arith.mulf %102, %106 : vector<16x16xf32>
    %cst_43 = arith.constant dense<0.000000e+00> : vector<16x16xf32>
    %108 = tpu.matmul %107, %95, %cst_43 {dimension_numbers = #tpu.dot_dimension_numbers<[1], [0], [0], [1], [0, 0, 1, 1], [], []>} : vector<16x16xf32>, vector<16x16xf32>, vector<16x16xf32> -> vector<16x16xf32>
    %109 = vector.extract_strided_slice %47 {offsets = [32, 0], sizes = [16, 48], strides = [1, 1]} : vector<48x48xf32> to vector<16x48xf32>
    %cst_44 = arith.constant dense<0.000000e+00> : vector<16x48xf32>
    %110 = tpu.matmul %108, %109, %cst_44 {dimension_numbers = #tpu.dot_dimension_numbers<[1], [0], [0], [1], [0, 0, 1, 1], [], []>} : vector<16x16xf32>, vector<16x48xf32>, vector<16x48xf32> -> vector<16x48xf32>
    %111 = arith.addf %90, %110 : vector<16x48xf32>
    %c0_45 = arith.constant 0 : index
    %c0_46 = arith.constant 0 : index
    %c0_47 = arith.constant 0 : index
    %112 = vector.load %arg8[%c0_45, %c0_46, %c0_47] : memref<2x1x48xf32, #tpu.memory_space<vmem>>, vector<1x1x48xf32>
    %113 = vector.shape_cast %112 : vector<1x1x48xf32> to vector<1x48xf32>
    %114 = vector.broadcast %113 : vector<1x48xf32> to vector<16x48xf32>
    %115 = arith.addf %111, %114 : vector<16x48xf32>
    %116 = arith.addf %23, %115 : vector<16x48xf32>
    %c0_48 = arith.constant 0 : index
    %c0_49 = arith.constant 0 : index
    %c0_50 = arith.constant 0 : index
    %117 = vector.load %arg9[%c0_48, %c0_49, %c0_50] : memref<2x1x48xf32, #tpu.memory_space<vmem>>, vector<1x1x48xf32>
    %118 = vector.shape_cast %117 : vector<1x1x48xf32> to vector<1x48xf32>
    %c0_51 = arith.constant 0 : index
    %c0_52 = arith.constant 0 : index
    %c0_53 = arith.constant 0 : index
    %119 = vector.load %arg10[%c0_51, %c0_52, %c0_53] : memref<2x1x48xf32, #tpu.memory_space<vmem>>, vector<1x1x48xf32>
    %120 = vector.shape_cast %119 : vector<1x1x48xf32> to vector<1x48xf32>
    %cst_54 = arith.constant dense<0.000000e+00> : vector<16xf32>
    %121 = vector.multi_reduction <add>, %116, %cst_54 [1] : vector<16x48xf32> to vector<16xf32>
    %122 = vector.shape_cast %121 : vector<16xf32> to vector<16x1xf32>
    %cst_55 = arith.constant 4.800000e+01 : f32
    %123 = vector.broadcast %cst_55 : f32 to vector<16x1xf32>
    %124 = arith.divf %122, %123 : vector<16x1xf32>
    %125 = vector.broadcast %124 : vector<16x1xf32> to vector<16x48xf32>
    %126 = arith.subf %116, %125 : vector<16x48xf32>
    %127 = arith.mulf %126, %126 : vector<16x48xf32>
    %cst_56 = arith.constant dense<0.000000e+00> : vector<16xf32>
    %128 = vector.multi_reduction <add>, %127, %cst_56 [1] : vector<16x48xf32> to vector<16xf32>
    %129 = vector.shape_cast %128 : vector<16xf32> to vector<16x1xf32>
    %cst_57 = arith.constant 4.800000e+01 : f32
    %130 = vector.broadcast %cst_57 : f32 to vector<16x1xf32>
    %131 = arith.divf %129, %130 : vector<16x1xf32>
    %cst_58 = arith.constant 9.99999974E-6 : f32
    %132 = vector.broadcast %cst_58 : f32 to vector<16x1xf32>
    %133 = arith.addf %131, %132 : vector<16x1xf32>
    %134 = math.rsqrt %133 : vector<16x1xf32>
    %135 = vector.broadcast %134 : vector<16x1xf32> to vector<16x48xf32>
    %136 = arith.mulf %126, %135 : vector<16x48xf32>
    %137 = vector.broadcast %118 : vector<1x48xf32> to vector<16x48xf32>
    %138 = arith.mulf %136, %137 : vector<16x48xf32>
    %139 = vector.broadcast %120 : vector<1x48xf32> to vector<16x48xf32>
    %140 = arith.addf %138, %139 : vector<16x48xf32>
    %c0_59 = arith.constant 0 : index
    %c0_60 = arith.constant 0 : index
    %c0_61 = arith.constant 0 : index
    %141 = vector.load %arg11[%c0_59, %c0_60, %c0_61] : memref<2x48x96xf32, #tpu.memory_space<vmem>>, vector<1x48x96xf32>
    %142 = vector.shape_cast %141 : vector<1x48x96xf32> to vector<48x96xf32>
    %cst_62 = arith.constant dense<0.000000e+00> : vector<16x96xf32>
    %143 = tpu.matmul %140, %142, %cst_62 {dimension_numbers = #tpu.dot_dimension_numbers<[1], [0], [0], [1], [0, 0, 1, 1], [], []>} : vector<16x48xf32>, vector<48x96xf32>, vector<16x96xf32> -> vector<16x96xf32>
    %c0_63 = arith.constant 0 : index
    %c0_64 = arith.constant 0 : index
    %c0_65 = arith.constant 0 : index
    %144 = vector.load %arg12[%c0_63, %c0_64, %c0_65] : memref<2x1x96xf32, #tpu.memory_space<vmem>>, vector<1x1x96xf32>
    %145 = vector.shape_cast %144 : vector<1x1x96xf32> to vector<1x96xf32>
    %146 = vector.broadcast %145 : vector<1x96xf32> to vector<16x96xf32>
    %147 = arith.addf %143, %146 : vector<16x96xf32>
    %cst_66 = arith.constant 0.000000e+00 : f32
    %148 = vector.broadcast %cst_66 : f32 to vector<16x96xf32>
    %149 = arith.maximumf %147, %148 : vector<16x96xf32>
    %c0_67 = arith.constant 0 : index
    %c0_68 = arith.constant 0 : index
    %c0_69 = arith.constant 0 : index
    %150 = vector.load %arg13[%c0_67, %c0_68, %c0_69] : memref<2x96x48xf32, #tpu.memory_space<vmem>>, vector<1x96x48xf32>
    %151 = vector.shape_cast %150 : vector<1x96x48xf32> to vector<96x48xf32>
    %cst_70 = arith.constant dense<0.000000e+00> : vector<16x48xf32>
    %152 = tpu.matmul %149, %151, %cst_70 {dimension_numbers = #tpu.dot_dimension_numbers<[1], [0], [0], [1], [0, 0, 1, 1], [], []>} : vector<16x96xf32>, vector<96x48xf32>, vector<16x48xf32> -> vector<16x48xf32>
    %c0_71 = arith.constant 0 : index
    %c0_72 = arith.constant 0 : index
    %c0_73 = arith.constant 0 : index
    %153 = vector.load %arg14[%c0_71, %c0_72, %c0_73] : memref<2x1x48xf32, #tpu.memory_space<vmem>>, vector<1x1x48xf32>
    %154 = vector.shape_cast %153 : vector<1x1x48xf32> to vector<1x48xf32>
    %155 = vector.broadcast %154 : vector<1x48xf32> to vector<16x48xf32>
    %156 = arith.addf %152, %155 : vector<16x48xf32>
    %157 = arith.addf %140, %156 : vector<16x48xf32>
    %c0_74 = arith.constant 0 : index
    %c0_75 = arith.constant 0 : index
    %c0_76 = arith.constant 0 : index
    %158 = vector.load %arg15[%c0_74, %c0_75, %c0_76] : memref<2x1x48xf32, #tpu.memory_space<vmem>>, vector<1x1x48xf32>
    %159 = vector.shape_cast %158 : vector<1x1x48xf32> to vector<1x48xf32>
    %c0_77 = arith.constant 0 : index
    %c0_78 = arith.constant 0 : index
    %c0_79 = arith.constant 0 : index
    %160 = vector.load %arg16[%c0_77, %c0_78, %c0_79] : memref<2x1x48xf32, #tpu.memory_space<vmem>>, vector<1x1x48xf32>
    %161 = vector.shape_cast %160 : vector<1x1x48xf32> to vector<1x48xf32>
    %cst_80 = arith.constant dense<0.000000e+00> : vector<16xf32>
    %162 = vector.multi_reduction <add>, %157, %cst_80 [1] : vector<16x48xf32> to vector<16xf32>
    %163 = vector.shape_cast %162 : vector<16xf32> to vector<16x1xf32>
    %cst_81 = arith.constant 4.800000e+01 : f32
    %164 = vector.broadcast %cst_81 : f32 to vector<16x1xf32>
    %165 = arith.divf %163, %164 : vector<16x1xf32>
    %166 = vector.broadcast %165 : vector<16x1xf32> to vector<16x48xf32>
    %167 = arith.subf %157, %166 : vector<16x48xf32>
    %168 = arith.mulf %167, %167 : vector<16x48xf32>
    %cst_82 = arith.constant dense<0.000000e+00> : vector<16xf32>
    %169 = vector.multi_reduction <add>, %168, %cst_82 [1] : vector<16x48xf32> to vector<16xf32>
    %170 = vector.shape_cast %169 : vector<16xf32> to vector<16x1xf32>
    %cst_83 = arith.constant 4.800000e+01 : f32
    %171 = vector.broadcast %cst_83 : f32 to vector<16x1xf32>
    %172 = arith.divf %170, %171 : vector<16x1xf32>
    %cst_84 = arith.constant 9.99999974E-6 : f32
    %173 = vector.broadcast %cst_84 : f32 to vector<16x1xf32>
    %174 = arith.addf %172, %173 : vector<16x1xf32>
    %175 = math.rsqrt %174 : vector<16x1xf32>
    %176 = vector.broadcast %175 : vector<16x1xf32> to vector<16x48xf32>
    %177 = arith.mulf %167, %176 : vector<16x48xf32>
    %178 = vector.broadcast %159 : vector<1x48xf32> to vector<16x48xf32>
    %179 = arith.mulf %177, %178 : vector<16x48xf32>
    %180 = vector.broadcast %161 : vector<1x48xf32> to vector<16x48xf32>
    %181 = arith.addf %179, %180 : vector<16x48xf32>
    %c1 = arith.constant 1 : index
    %c0_85 = arith.constant 0 : index
    %c0_86 = arith.constant 0 : index
    %182 = vector.load %arg5[%c1, %c0_85, %c0_86] : memref<2x48x144xf32, #tpu.memory_space<vmem>>, vector<1x48x144xf32>
    %183 = vector.shape_cast %182 : vector<1x48x144xf32> to vector<48x144xf32>
    %cst_87 = arith.constant dense<0.000000e+00> : vector<16x144xf32>
    %184 = tpu.matmul %181, %183, %cst_87 {dimension_numbers = #tpu.dot_dimension_numbers<[1], [0], [0], [1], [0, 0, 1, 1], [], []>} : vector<16x48xf32>, vector<48x144xf32>, vector<16x144xf32> -> vector<16x144xf32>
    %c1_88 = arith.constant 1 : index
    %c0_89 = arith.constant 0 : index
    %c0_90 = arith.constant 0 : index
    %185 = vector.load %arg6[%c1_88, %c0_89, %c0_90] : memref<2x1x144xf32, #tpu.memory_space<vmem>>, vector<1x1x144xf32>
    %186 = vector.shape_cast %185 : vector<1x1x144xf32> to vector<1x144xf32>
    %187 = vector.broadcast %186 : vector<1x144xf32> to vector<16x144xf32>
    %188 = arith.addf %184, %187 : vector<16x144xf32>
    %c1_91 = arith.constant 1 : index
    %c0_92 = arith.constant 0 : index
    %c0_93 = arith.constant 0 : index
    %189 = vector.load %arg7[%c1_91, %c0_92, %c0_93] : memref<2x48x48xf32, #tpu.memory_space<vmem>>, vector<1x48x48xf32>
    %190 = vector.shape_cast %189 : vector<1x48x48xf32> to vector<48x48xf32>
    %cst_94 = arith.constant 0.000000e+00 : f32
    %191 = vector.broadcast %cst_94 : f32 to vector<16x48xf32>
    %192 = vector.extract_strided_slice %188 {offsets = [0, 0], sizes = [16, 16], strides = [1, 1]} : vector<16x144xf32> to vector<16x16xf32>
    %cst_95 = arith.constant 2.500000e-01 : f32
    %193 = vector.broadcast %cst_95 : f32 to vector<16x16xf32>
    %194 = arith.mulf %192, %193 : vector<16x16xf32>
    %195 = vector.extract_strided_slice %188 {offsets = [0, 48], sizes = [16, 16], strides = [1, 1]} : vector<16x144xf32> to vector<16x16xf32>
    %196 = vector.extract_strided_slice %188 {offsets = [0, 96], sizes = [16, 16], strides = [1, 1]} : vector<16x144xf32> to vector<16x16xf32>
    %cst_96 = arith.constant dense<0.000000e+00> : vector<16x16xf32>
    %197 = tpu.matmul %194, %195, %cst_96 {dimension_numbers = #tpu.dot_dimension_numbers<[1], [1], [0], [0], [0, 0, 1, 0], [], []>} : vector<16x16xf32>, vector<16x16xf32>, vector<16x16xf32> -> vector<16x16xf32>
    %198 = arith.addf %197, %38 : vector<16x16xf32>
    %cst_97 = arith.constant dense<0xFF800000> : vector<16xf32>
    %199 = vector.multi_reduction <maximumf>, %198, %cst_97 [1] : vector<16x16xf32> to vector<16xf32>
    %200 = vector.shape_cast %199 : vector<16xf32> to vector<16x1xf32>
    %201 = vector.broadcast %200 : vector<16x1xf32> to vector<16x16xf32>
    %202 = arith.subf %198, %201 : vector<16x16xf32>
    %203 = math.exp %202 : vector<16x16xf32>
    %cst_98 = arith.constant dense<0.000000e+00> : vector<16xf32>
    %204 = vector.multi_reduction <add>, %203, %cst_98 [1] : vector<16x16xf32> to vector<16xf32>
    %205 = vector.shape_cast %204 : vector<16xf32> to vector<16x1xf32>
    %206 = tpu.reciprocal %205 {approx = true} : vector<16x1xf32> -> vector<16x1xf32>
    %207 = vector.broadcast %206 : vector<16x1xf32> to vector<16x16xf32>
    %208 = arith.mulf %203, %207 : vector<16x16xf32>
    %cst_99 = arith.constant dense<0.000000e+00> : vector<16x16xf32>
    %209 = tpu.matmul %208, %196, %cst_99 {dimension_numbers = #tpu.dot_dimension_numbers<[1], [0], [0], [1], [0, 0, 1, 1], [], []>} : vector<16x16xf32>, vector<16x16xf32>, vector<16x16xf32> -> vector<16x16xf32>
    %210 = vector.extract_strided_slice %190 {offsets = [0, 0], sizes = [16, 48], strides = [1, 1]} : vector<48x48xf32> to vector<16x48xf32>
    %cst_100 = arith.constant dense<0.000000e+00> : vector<16x48xf32>
    %211 = tpu.matmul %209, %210, %cst_100 {dimension_numbers = #tpu.dot_dimension_numbers<[1], [0], [0], [1], [0, 0, 1, 1], [], []>} : vector<16x16xf32>, vector<16x48xf32>, vector<16x48xf32> -> vector<16x48xf32>
    %212 = arith.addf %191, %211 : vector<16x48xf32>
    %213 = vector.extract_strided_slice %188 {offsets = [0, 16], sizes = [16, 16], strides = [1, 1]} : vector<16x144xf32> to vector<16x16xf32>
    %cst_101 = arith.constant 2.500000e-01 : f32
    %214 = vector.broadcast %cst_101 : f32 to vector<16x16xf32>
    %215 = arith.mulf %213, %214 : vector<16x16xf32>
    %216 = vector.extract_strided_slice %188 {offsets = [0, 64], sizes = [16, 16], strides = [1, 1]} : vector<16x144xf32> to vector<16x16xf32>
    %217 = vector.extract_strided_slice %188 {offsets = [0, 112], sizes = [16, 16], strides = [1, 1]} : vector<16x144xf32> to vector<16x16xf32>
    %cst_102 = arith.constant dense<0.000000e+00> : vector<16x16xf32>
    %218 = tpu.matmul %215, %216, %cst_102 {dimension_numbers = #tpu.dot_dimension_numbers<[1], [1], [0], [0], [0, 0, 1, 0], [], []>} : vector<16x16xf32>, vector<16x16xf32>, vector<16x16xf32> -> vector<16x16xf32>
    %219 = arith.addf %218, %38 : vector<16x16xf32>
    %cst_103 = arith.constant dense<0xFF800000> : vector<16xf32>
    %220 = vector.multi_reduction <maximumf>, %219, %cst_103 [1] : vector<16x16xf32> to vector<16xf32>
    %221 = vector.shape_cast %220 : vector<16xf32> to vector<16x1xf32>
    %222 = vector.broadcast %221 : vector<16x1xf32> to vector<16x16xf32>
    %223 = arith.subf %219, %222 : vector<16x16xf32>
    %224 = math.exp %223 : vector<16x16xf32>
    %cst_104 = arith.constant dense<0.000000e+00> : vector<16xf32>
    %225 = vector.multi_reduction <add>, %224, %cst_104 [1] : vector<16x16xf32> to vector<16xf32>
    %226 = vector.shape_cast %225 : vector<16xf32> to vector<16x1xf32>
    %227 = tpu.reciprocal %226 {approx = true} : vector<16x1xf32> -> vector<16x1xf32>
    %228 = vector.broadcast %227 : vector<16x1xf32> to vector<16x16xf32>
    %229 = arith.mulf %224, %228 : vector<16x16xf32>
    %cst_105 = arith.constant dense<0.000000e+00> : vector<16x16xf32>
    %230 = tpu.matmul %229, %217, %cst_105 {dimension_numbers = #tpu.dot_dimension_numbers<[1], [0], [0], [1], [0, 0, 1, 1], [], []>} : vector<16x16xf32>, vector<16x16xf32>, vector<16x16xf32> -> vector<16x16xf32>
    %231 = vector.extract_strided_slice %190 {offsets = [16, 0], sizes = [16, 48], strides = [1, 1]} : vector<48x48xf32> to vector<16x48xf32>
    %cst_106 = arith.constant dense<0.000000e+00> : vector<16x48xf32>
    %232 = tpu.matmul %230, %231, %cst_106 {dimension_numbers = #tpu.dot_dimension_numbers<[1], [0], [0], [1], [0, 0, 1, 1], [], []>} : vector<16x16xf32>, vector<16x48xf32>, vector<16x48xf32> -> vector<16x48xf32>
    %233 = arith.addf %212, %232 : vector<16x48xf32>
    %234 = vector.extract_strided_slice %188 {offsets = [0, 32], sizes = [16, 16], strides = [1, 1]} : vector<16x144xf32> to vector<16x16xf32>
    %cst_107 = arith.constant 2.500000e-01 : f32
    %235 = vector.broadcast %cst_107 : f32 to vector<16x16xf32>
    %236 = arith.mulf %234, %235 : vector<16x16xf32>
    %237 = vector.extract_strided_slice %188 {offsets = [0, 80], sizes = [16, 16], strides = [1, 1]} : vector<16x144xf32> to vector<16x16xf32>
    %238 = vector.extract_strided_slice %188 {offsets = [0, 128], sizes = [16, 16], strides = [1, 1]} : vector<16x144xf32> to vector<16x16xf32>
    %cst_108 = arith.constant dense<0.000000e+00> : vector<16x16xf32>
    %239 = tpu.matmul %236, %237, %cst_108 {dimension_numbers = #tpu.dot_dimension_numbers<[1], [1], [0], [0], [0, 0, 1, 0], [], []>} : vector<16x16xf32>, vector<16x16xf32>, vector<16x16xf32> -> vector<16x16xf32>
    %240 = arith.addf %239, %38 : vector<16x16xf32>
    %cst_109 = arith.constant dense<0xFF800000> : vector<16xf32>
    %241 = vector.multi_reduction <maximumf>, %240, %cst_109 [1] : vector<16x16xf32> to vector<16xf32>
    %242 = vector.shape_cast %241 : vector<16xf32> to vector<16x1xf32>
    %243 = vector.broadcast %242 : vector<16x1xf32> to vector<16x16xf32>
    %244 = arith.subf %240, %243 : vector<16x16xf32>
    %245 = math.exp %244 : vector<16x16xf32>
    %cst_110 = arith.constant dense<0.000000e+00> : vector<16xf32>
    %246 = vector.multi_reduction <add>, %245, %cst_110 [1] : vector<16x16xf32> to vector<16xf32>
    %247 = vector.shape_cast %246 : vector<16xf32> to vector<16x1xf32>
    %248 = tpu.reciprocal %247 {approx = true} : vector<16x1xf32> -> vector<16x1xf32>
    %249 = vector.broadcast %248 : vector<16x1xf32> to vector<16x16xf32>
    %250 = arith.mulf %245, %249 : vector<16x16xf32>
    %cst_111 = arith.constant dense<0.000000e+00> : vector<16x16xf32>
    %251 = tpu.matmul %250, %238, %cst_111 {dimension_numbers = #tpu.dot_dimension_numbers<[1], [0], [0], [1], [0, 0, 1, 1], [], []>} : vector<16x16xf32>, vector<16x16xf32>, vector<16x16xf32> -> vector<16x16xf32>
    %252 = vector.extract_strided_slice %190 {offsets = [32, 0], sizes = [16, 48], strides = [1, 1]} : vector<48x48xf32> to vector<16x48xf32>
    %cst_112 = arith.constant dense<0.000000e+00> : vector<16x48xf32>
    %253 = tpu.matmul %251, %252, %cst_112 {dimension_numbers = #tpu.dot_dimension_numbers<[1], [0], [0], [1], [0, 0, 1, 1], [], []>} : vector<16x16xf32>, vector<16x48xf32>, vector<16x48xf32> -> vector<16x48xf32>
    %254 = arith.addf %233, %253 : vector<16x48xf32>
    %c1_113 = arith.constant 1 : index
    %c0_114 = arith.constant 0 : index
    %c0_115 = arith.constant 0 : index
    %255 = vector.load %arg8[%c1_113, %c0_114, %c0_115] : memref<2x1x48xf32, #tpu.memory_space<vmem>>, vector<1x1x48xf32>
    %256 = vector.shape_cast %255 : vector<1x1x48xf32> to vector<1x48xf32>
    %257 = vector.broadcast %256 : vector<1x48xf32> to vector<16x48xf32>
    %258 = arith.addf %254, %257 : vector<16x48xf32>
    %259 = arith.addf %181, %258 : vector<16x48xf32>
    %c1_116 = arith.constant 1 : index
    %c0_117 = arith.constant 0 : index
    %c0_118 = arith.constant 0 : index
    %260 = vector.load %arg9[%c1_116, %c0_117, %c0_118] : memref<2x1x48xf32, #tpu.memory_space<vmem>>, vector<1x1x48xf32>
    %261 = vector.shape_cast %260 : vector<1x1x48xf32> to vector<1x48xf32>
    %c1_119 = arith.constant 1 : index
    %c0_120 = arith.constant 0 : index
    %c0_121 = arith.constant 0 : index
    %262 = vector.load %arg10[%c1_119, %c0_120, %c0_121] : memref<2x1x48xf32, #tpu.memory_space<vmem>>, vector<1x1x48xf32>
    %263 = vector.shape_cast %262 : vector<1x1x48xf32> to vector<1x48xf32>
    %cst_122 = arith.constant dense<0.000000e+00> : vector<16xf32>
    %264 = vector.multi_reduction <add>, %259, %cst_122 [1] : vector<16x48xf32> to vector<16xf32>
    %265 = vector.shape_cast %264 : vector<16xf32> to vector<16x1xf32>
    %cst_123 = arith.constant 4.800000e+01 : f32
    %266 = vector.broadcast %cst_123 : f32 to vector<16x1xf32>
    %267 = arith.divf %265, %266 : vector<16x1xf32>
    %268 = vector.broadcast %267 : vector<16x1xf32> to vector<16x48xf32>
    %269 = arith.subf %259, %268 : vector<16x48xf32>
    %270 = arith.mulf %269, %269 : vector<16x48xf32>
    %cst_124 = arith.constant dense<0.000000e+00> : vector<16xf32>
    %271 = vector.multi_reduction <add>, %270, %cst_124 [1] : vector<16x48xf32> to vector<16xf32>
    %272 = vector.shape_cast %271 : vector<16xf32> to vector<16x1xf32>
    %cst_125 = arith.constant 4.800000e+01 : f32
    %273 = vector.broadcast %cst_125 : f32 to vector<16x1xf32>
    %274 = arith.divf %272, %273 : vector<16x1xf32>
    %cst_126 = arith.constant 9.99999974E-6 : f32
    %275 = vector.broadcast %cst_126 : f32 to vector<16x1xf32>
    %276 = arith.addf %274, %275 : vector<16x1xf32>
    %277 = math.rsqrt %276 : vector<16x1xf32>
    %278 = vector.broadcast %277 : vector<16x1xf32> to vector<16x48xf32>
    %279 = arith.mulf %269, %278 : vector<16x48xf32>
    %280 = vector.broadcast %261 : vector<1x48xf32> to vector<16x48xf32>
    %281 = arith.mulf %279, %280 : vector<16x48xf32>
    %282 = vector.broadcast %263 : vector<1x48xf32> to vector<16x48xf32>
    %283 = arith.addf %281, %282 : vector<16x48xf32>
    %c1_127 = arith.constant 1 : index
    %c0_128 = arith.constant 0 : index
    %c0_129 = arith.constant 0 : index
    %284 = vector.load %arg11[%c1_127, %c0_128, %c0_129] : memref<2x48x96xf32, #tpu.memory_space<vmem>>, vector<1x48x96xf32>
    %285 = vector.shape_cast %284 : vector<1x48x96xf32> to vector<48x96xf32>
    %cst_130 = arith.constant dense<0.000000e+00> : vector<16x96xf32>
    %286 = tpu.matmul %283, %285, %cst_130 {dimension_numbers = #tpu.dot_dimension_numbers<[1], [0], [0], [1], [0, 0, 1, 1], [], []>} : vector<16x48xf32>, vector<48x96xf32>, vector<16x96xf32> -> vector<16x96xf32>
    %c1_131 = arith.constant 1 : index
    %c0_132 = arith.constant 0 : index
    %c0_133 = arith.constant 0 : index
    %287 = vector.load %arg12[%c1_131, %c0_132, %c0_133] : memref<2x1x96xf32, #tpu.memory_space<vmem>>, vector<1x1x96xf32>
    %288 = vector.shape_cast %287 : vector<1x1x96xf32> to vector<1x96xf32>
    %289 = vector.broadcast %288 : vector<1x96xf32> to vector<16x96xf32>
    %290 = arith.addf %286, %289 : vector<16x96xf32>
    %cst_134 = arith.constant 0.000000e+00 : f32
    %291 = vector.broadcast %cst_134 : f32 to vector<16x96xf32>
    %292 = arith.maximumf %290, %291 : vector<16x96xf32>
    %c1_135 = arith.constant 1 : index
    %c0_136 = arith.constant 0 : index
    %c0_137 = arith.constant 0 : index
    %293 = vector.load %arg13[%c1_135, %c0_136, %c0_137] : memref<2x96x48xf32, #tpu.memory_space<vmem>>, vector<1x96x48xf32>
    %294 = vector.shape_cast %293 : vector<1x96x48xf32> to vector<96x48xf32>
    %cst_138 = arith.constant dense<0.000000e+00> : vector<16x48xf32>
    %295 = tpu.matmul %292, %294, %cst_138 {dimension_numbers = #tpu.dot_dimension_numbers<[1], [0], [0], [1], [0, 0, 1, 1], [], []>} : vector<16x96xf32>, vector<96x48xf32>, vector<16x48xf32> -> vector<16x48xf32>
    %c1_139 = arith.constant 1 : index
    %c0_140 = arith.constant 0 : index
    %c0_141 = arith.constant 0 : index
    %296 = vector.load %arg14[%c1_139, %c0_140, %c0_141] : memref<2x1x48xf32, #tpu.memory_space<vmem>>, vector<1x1x48xf32>
    %297 = vector.shape_cast %296 : vector<1x1x48xf32> to vector<1x48xf32>
    %298 = vector.broadcast %297 : vector<1x48xf32> to vector<16x48xf32>
    %299 = arith.addf %295, %298 : vector<16x48xf32>
    %300 = arith.addf %283, %299 : vector<16x48xf32>
    %c1_142 = arith.constant 1 : index
    %c0_143 = arith.constant 0 : index
    %c0_144 = arith.constant 0 : index
    %301 = vector.load %arg15[%c1_142, %c0_143, %c0_144] : memref<2x1x48xf32, #tpu.memory_space<vmem>>, vector<1x1x48xf32>
    %302 = vector.shape_cast %301 : vector<1x1x48xf32> to vector<1x48xf32>
    %c1_145 = arith.constant 1 : index
    %c0_146 = arith.constant 0 : index
    %c0_147 = arith.constant 0 : index
    %303 = vector.load %arg16[%c1_145, %c0_146, %c0_147] : memref<2x1x48xf32, #tpu.memory_space<vmem>>, vector<1x1x48xf32>
    %304 = vector.shape_cast %303 : vector<1x1x48xf32> to vector<1x48xf32>
    %cst_148 = arith.constant dense<0.000000e+00> : vector<16xf32>
    %305 = vector.multi_reduction <add>, %300, %cst_148 [1] : vector<16x48xf32> to vector<16xf32>
    %306 = vector.shape_cast %305 : vector<16xf32> to vector<16x1xf32>
    %cst_149 = arith.constant 4.800000e+01 : f32
    %307 = vector.broadcast %cst_149 : f32 to vector<16x1xf32>
    %308 = arith.divf %306, %307 : vector<16x1xf32>
    %309 = vector.broadcast %308 : vector<16x1xf32> to vector<16x48xf32>
    %310 = arith.subf %300, %309 : vector<16x48xf32>
    %311 = arith.mulf %310, %310 : vector<16x48xf32>
    %cst_150 = arith.constant dense<0.000000e+00> : vector<16xf32>
    %312 = vector.multi_reduction <add>, %311, %cst_150 [1] : vector<16x48xf32> to vector<16xf32>
    %313 = vector.shape_cast %312 : vector<16xf32> to vector<16x1xf32>
    %cst_151 = arith.constant 4.800000e+01 : f32
    %314 = vector.broadcast %cst_151 : f32 to vector<16x1xf32>
    %315 = arith.divf %313, %314 : vector<16x1xf32>
    %cst_152 = arith.constant 9.99999974E-6 : f32
    %316 = vector.broadcast %cst_152 : f32 to vector<16x1xf32>
    %317 = arith.addf %315, %316 : vector<16x1xf32>
    %318 = math.rsqrt %317 : vector<16x1xf32>
    %319 = vector.broadcast %318 : vector<16x1xf32> to vector<16x48xf32>
    %320 = arith.mulf %310, %319 : vector<16x48xf32>
    %321 = vector.broadcast %302 : vector<1x48xf32> to vector<16x48xf32>
    %322 = arith.mulf %320, %321 : vector<16x48xf32>
    %323 = vector.broadcast %304 : vector<1x48xf32> to vector<16x48xf32>
    %324 = arith.addf %322, %323 : vector<16x48xf32>
    %c0_153 = arith.constant 0 : index
    %c0_154 = arith.constant 0 : index
    %325 = vector.load %arg17[%c0_153, %c0_154] : memref<48x128xf32, #tpu.memory_space<vmem>>, vector<48x128xf32>
    %cst_155 = arith.constant dense<0.000000e+00> : vector<16x128xf32>
    %326 = tpu.matmul %324, %325, %cst_155 {dimension_numbers = #tpu.dot_dimension_numbers<[1], [0], [0], [1], [0, 0, 1, 1], [], []>} : vector<16x48xf32>, vector<48x128xf32>, vector<16x128xf32> -> vector<16x128xf32>
    %c0_156 = arith.constant 0 : index
    %c0_157 = arith.constant 0 : index
    %c0_158 = arith.constant 0 : index
    %327 = vector.load %arg18[%c0_156, %c0_157, %c0_158] : memref<1x16x128xf32, #tpu.memory_space<vmem>>, vector<1x16x128xf32>
    %328 = vector.shape_cast %327 : vector<1x16x128xf32> to vector<16x128xf32>
    %329 = vector.shape_cast %326 : vector<16x128xf32> to vector<1x16x128xf32>
    tpu.vector_store %arg18[%c0_156, %c0_157, %c0_158], %329 {strides = array<i32>} : memref<1x16x128xf32, #tpu.memory_space<vmem>>, vector<1x16x128xf32>,
    return
  }
  func.func @transform_0(%arg0: i32) -> (i32, i32, i32) {
    %c0_i32 = arith.constant 0 : i32
    %c0_i32_0 = arith.constant 0 : i32
    %c0_i32_1 = arith.constant 0 : i32
    return %arg0, %c0_i32, %c0_i32_0 : i32, i32, i32
  }
  func.func @transform_1(%arg0: i32) -> (i32, i32) {
    %c0_i32 = arith.constant 0 : i32
    %c0_i32_0 = arith.constant 0 : i32
    %c0_i32_1 = arith.constant 0 : i32
    return %c0_i32, %c0_i32_0 : i32, i32
  }
  func.func @transform_2(%arg0: i32) -> (i32, i32) {
    %c0_i32 = arith.constant 0 : i32
    %c0_i32_0 = arith.constant 0 : i32
    %c0_i32_1 = arith.constant 0 : i32
    return %c0_i32, %c0_i32_0 : i32, i32
  }
  func.func @transform_3(%arg0: i32) -> (i32, i32) {
    %c0_i32 = arith.constant 0 : i32
    %c0_i32_0 = arith.constant 0 : i32
    %c0_i32_1 = arith.constant 0 : i32
    return %c0_i32, %c0_i32_0 : i32, i32
  }
  func.func @transform_4(%arg0: i32) -> (i32, i32, i32) {
    %c0_i32 = arith.constant 0 : i32
    %c0_i32_0 = arith.constant 0 : i32
    %c0_i32_1 = arith.constant 0 : i32
    %c0_i32_2 = arith.constant 0 : i32
    return %c0_i32, %c0_i32_0, %c0_i32_1 : i32, i32, i32
  }
  func.func @transform_5(%arg0: i32) -> (i32, i32, i32) {
    %c0_i32 = arith.constant 0 : i32
    %c0_i32_0 = arith.constant 0 : i32
    %c0_i32_1 = arith.constant 0 : i32
    %c0_i32_2 = arith.constant 0 : i32
    return %c0_i32, %c0_i32_0, %c0_i32_1 : i32, i32, i32
  }
  func.func @transform_6(%arg0: i32) -> (i32, i32, i32) {
    %c0_i32 = arith.constant 0 : i32
    %c0_i32_0 = arith.constant 0 : i32
    %c0_i32_1 = arith.constant 0 : i32
    %c0_i32_2 = arith.constant 0 : i32
    return %c0_i32, %c0_i32_0, %c0_i32_1 : i32, i32, i32
  }
  func.func @transform_7(%arg0: i32) -> (i32, i32, i32) {
    %c0_i32 = arith.constant 0 : i32
    %c0_i32_0 = arith.constant 0 : i32
    %c0_i32_1 = arith.constant 0 : i32
    %c0_i32_2 = arith.constant 0 : i32
    return %c0_i32, %c0_i32_0, %c0_i32_1 : i32, i32, i32
  }
  func.func @transform_8(%arg0: i32) -> (i32, i32, i32) {
    %c0_i32 = arith.constant 0 : i32
    %c0_i32_0 = arith.constant 0 : i32
    %c0_i32_1 = arith.constant 0 : i32
    %c0_i32_2 = arith.constant 0 : i32
    return %c0_i32, %c0_i32_0, %c0_i32_1 : i32, i32, i32
  }
  func.func @transform_9(%arg0: i32) -> (i32, i32, i32) {
    %c0_i32 = arith.constant 0 : i32
    %c0_i32_0 = arith.constant 0 : i32
    %c0_i32_1 = arith.constant 0 : i32
    %c0_i32_2 = arith.constant 0 : i32
    return %c0_i32, %c0_i32_0, %c0_i32_1 : i32, i32, i32
  }
  func.func @transform_10(%arg0: i32) -> (i32, i32, i32) {
    %c0_i32 = arith.constant 0 : i32
    %c0_i32_0 = arith.constant 0 : i32
    %c0_i32_1 = arith.constant 0 : i32
    %c0_i32_2 = arith.constant 0 : i32
    return %c0_i32, %c0_i32_0, %c0_i32_1 : i32, i32, i32
  }
  func.func @transform_11(%arg0: i32) -> (i32, i32, i32) {
    %c0_i32 = arith.constant 0 : i32
    %c0_i32_0 = arith.constant 0 : i32
    %c0_i32_1 = arith.constant 0 : i32
    %c0_i32_2 = arith.constant 0 : i32
    return %c0_i32, %c0_i32_0, %c0_i32_1 : i32, i32, i32
  }
  func.func @transform_12(%arg0: i32) -> (i32, i32, i32) {
    %c0_i32 = arith.constant 0 : i32
    %c0_i32_0 = arith.constant 0 : i32
    %c0_i32_1 = arith.constant 0 : i32
    %c0_i32_2 = arith.constant 0 : i32
    return %c0_i32, %c0_i32_0, %c0_i32_1 : i32, i32, i32
  }
  func.func @transform_13(%arg0: i32) -> (i32, i32, i32) {
    %c0_i32 = arith.constant 0 : i32
    %c0_i32_0 = arith.constant 0 : i32
    %c0_i32_1 = arith.constant 0 : i32
    %c0_i32_2 = arith.constant 0 : i32
    return %c0_i32, %c0_i32_0, %c0_i32_1 : i32, i32, i32
  }
  func.func @transform_14(%arg0: i32) -> (i32, i32, i32) {
    %c0_i32 = arith.constant 0 : i32
    %c0_i32_0 = arith.constant 0 : i32
    %c0_i32_1 = arith.constant 0 : i32
    %c0_i32_2 = arith.constant 0 : i32
    return %c0_i32, %c0_i32_0, %c0_i32_1 : i32, i32, i32
  }
  func.func @transform_15(%arg0: i32) -> (i32, i32, i32) {
    %c0_i32 = arith.constant 0 : i32
    %c0_i32_0 = arith.constant 0 : i32
    %c0_i32_1 = arith.constant 0 : i32
    %c0_i32_2 = arith.constant 0 : i32
    return %c0_i32, %c0_i32_0, %c0_i32_1 : i32, i32, i32
  }
  func.func @transform_16(%arg0: i32) -> (i32, i32) {
    %c0_i32 = arith.constant 0 : i32
    %c0_i32_0 = arith.constant 0 : i32
    %c0_i32_1 = arith.constant 0 : i32
    return %c0_i32, %c0_i32_0 : i32, i32
  }
  func.func @transform_17(%arg0: i32) -> (i32, i32, i32) {
    %c0_i32 = arith.constant 0 : i32
    %c0_i32_0 = arith.constant 0 : i32
    %c0_i32_1 = arith.constant 0 : i32
    return %arg0, %c0_i32, %c0_i32_0 : i32, i32, i32
  }
}

</mosaic_0001>

<bundles_post_ra>
// kernel: tpu_custom_call.1
= control target key start
LH: loop header
LB: loop body
LE: loop exit
PB: predicated region body
PF: predicated region fallthrough
CT: control target
= control target key end

     0   :  { %s5838_s0 = inlined_call_operand.hbm [shape: f32[2,16,48], index: 0, kind: input, shape index: {}]   ;;  %s5839_s1 = inlined_call_operand.hbm [shape: f32[2,16], index: 1, kind: input, shape index: {}]   ;;  %s5840_s2 = inlined_call_operand.vmem [shape: f32[1,48], index: 2, kind: input, shape index: {}]   ;;  %s5841_s3 = inlined_call_operand.hbm [shape: f32[1,48], index: 3, kind: input, shape index: {}]   ;;  %s5842_s4 = inlined_call_operand.vmem [shape: f32[2,48,144], index: 4, kind: input, shape index: {}]   ;;  %s5843_s5 = inlined_call_operand.hbm [shape: f32[2,1,144], index: 5, kind: input, shape index: {}]   ;;  %s5844_s6 = inlined_call_operand.vmem [shape: f32[2,48,48], index: 6, kind: input, shape index: {}]   ;;  %s5845_s7 = inlined_call_operand.hbm [shape: f32[2,1,48], index: 7, kind: input, shape index: {}]   ;;  %s5846_s8 = inlined_call_operand.hbm [shape: f32[2,1,48], index: 8, kind: input, shape index: {}]   ;;  %s5847_s9 = inlined_call_operand.hbm [shape: f32[2,1,48], index: 9, kind: input, shape index: {}]   ;;  %s5848_s10 = inlined_call_operand.hbm [shape: f32[2,48,96], index: 10, kind: input, shape index: {}]   ;;  %s5849_s11 = inlined_call_operand.hbm [shape: f32[2,1,96], index: 11, kind: input, shape index: {}]   ;;  %s5850_s12 = inlined_call_operand.vmem [shape: f32[2,96,48], index: 12, kind: input, shape index: {}]   ;;  %s5851_s13 = inlined_call_operand.hbm [shape: f32[2,1,48], index: 13, kind: input, shape index: {}]   ;;  %s5852_s14 = inlined_call_operand.vmem [shape: f32[2,1,48], index: 14, kind: input, shape index: {}]   ;;  %s5853_s15 = inlined_call_operand.vmem [shape: f32[2,1,48], index: 15, kind: input, shape index: {}]   ;;  %s5854_s16 = inlined_call_operand.vmem [shape: f32[48,128], index: 16, kind: input, shape index: {}]   ;;  %s5855_s17 = inlined_call_operand.hbm [shape: f32[2,16,128], index: 17, kind: output, shape index: {}]  }
   0x1   :  { %5886 = sst [smem:[#allocation27_spill]] %s5838_s0 }
   0x2   :  { %5887 = sst [smem:[#allocation28_spill]] %s5839_s1 }
   0x3   :  { %5888 = sst [smem:[#allocation29_spill]] %s5840_s2 }
   0x4   :  { %5889 = sst [smem:[#allocation30_spill]] %s5841_s3 }
   0x5   :  { %5890 = sst [smem:[#allocation31_spill]] %s5842_s4 }
   0x6   :  { %5891 = sst [smem:[#allocation32_spill]] %s5843_s5 }
   0x7   :  { %5892 = sst [smem:[#allocation33_spill]] %s5844_s6 }
   0x8   :  { %5893 = sst [smem:[#allocation34_spill]] %s5850_s12 }
   0x9   :  { %5894 = sst [smem:[#allocation35_spill]] %s5852_s14 }
   0xa   :  { %5895 = sst [smem:[#allocation36_spill]] %s5853_s15 }
   0xb   :  { %5896 = sst [smem:[#allocation37_spill]] %s5854_s16 }
   0xc   :  { %5897 = sst [smem:[#allocation38_spill]] %s5855_s17 }
   0xd   :  { %22 = vsyncpa [#allocation3], 0 }
   0xe   :  { %24 = vsyncpa [#allocation3 + $0x1], 0 }
   0xf   :  { %25 = vsyncpa [#allocation6], 0 }
  0x10   :  { %26 = vsyncpa [#allocation9], 0 }
  0x11   :  { %27 = vsyncpa [#allocation12], 0 }
  0x12   :  { %28 = vsyncpa [#allocation15], 0 }
  0x13   :  { %29 = vsyncpa [#allocation18], 0 }
  0x14   :  { %30 = vsyncpa [#allocation4], 0 }
  0x15   :  { %32 = vsyncpa [#allocation4 + $0x1], 0  ;;  %s4997_s24 = smov 0   ;;  %s4999_s25 = smov 0  }
  0x16   :  { %s5001_s26 = smov 0   ;;  %s5003_s27 = smov 0  }
  0x17 LB: > { %s4879_s28 = smov [#allocation5]   ;;  %s5018_s0 = sadd.s32 4294967295, %s4877_s27   ;;  %s4877_s27 = sphi %s5003_s27, %s5949_s27   ;;  %s4873_s26 = sphi %s5001_s26, %s5948_s26   ;;  %s4869_s25 = sphi %s4999_s25, %s5947_s25   ;;  %s4865_s24 = sphi %s4997_s24, %s5946_s24  }
  0x18   : > { %s444_s29 = sshll.u32 %s4879_s28, 4  ;;  %p3541_p0 = scmp.ge.s32.totalorder %s4877_s27, 1  ;;  %s445_s29 = int_to_ptr.vmem [resolvable:$true] %s444_s29 }
  0x19   : > { %p5862_p1 = scmp.eq.s32.totalorder %s5018_s0, 0  ;;  %p431_p2 = scmp.lt.s32.totalorder %s4877_s27, 3 }
  0x1a   : > { %s4880_s18 = smov [#allocation8]   ;;  %s4881_s20 = smov [#allocation11]  }
  0x1b   : > { %p5023_p3 = pnand %p3541_p0, %p431_p2  ;;  %s471_s19 = sshll.u32 %s4880_s18, 4  ;;  %s5030_s19 = int_to_ptr.vmem [resolvable:$true] %s471_s19 }
  0x1c   : > { %s5038_s21 = sshll.u32 %s4881_s20, 4  ;;  %s5900_s28 = sld [smem:[#allocation28_spill]]  ;;  %s501_s21 = int_to_ptr.vmem [resolvable:$true] %s5038_s21 }
  0x1d   : > { %s5898_s30 = scalar_select %p5023_p3, 1, 0 }
  0x1e   : > { %p4277_p5 = pneg %p5023_p3 }
  0x20   : > { %p5034_p6 = pnand %p4277_p5, %p5862_p1 }
  0x22   : > { %s4509_s17 = scalar_lea.hbm %s5900_s28, 32  ;;  %p5048_p8 = pneg %p5034_p6 }
  0x23   : > { %p4510_p7 = scmp.ne.s32.totalorder %s5900_s28, %s4509_s17  ;;  %p4516_p11 = scmp.lt.u32.totalorder %s4509_s17, %s5900_s28 }
  0x25   : > { %p4512_p9 = pnand %p5048_p8, %p4510_p7 }
  0x27   : > { %p4513_p10 = pneg %p4512_p9 }
  0x29   : > { %p4518_p12 = pnand %p4516_p11, %p4513_p10 }
  0x2b   : > { %4521 = shalt.err (!%p4518_p12)
}
  0x2c   : > { %s4522_s22 = scalar_lea.vmem %s445_s29, 32  ;;  %p4530_p5 = scmp.lt.s32.totalorder %s445_s29, %s445_s29 }
  0x2d   : > { %p4523_p13 = scmp.ne.s32.totalorder %s445_s29, %s4522_s22  ;;  %p4531_p4 = scmp.lt.s32.totalorder %s4522_s22, %s4522_s22 }
  0x2f   : > { %p4525_p0 = pnand %p4523_p13, %p5048_p8  ;;  %p4532_p1 = por %p4531_p4, %p4530_p5 }
  0x31   : > { %p4526_p2 = pneg %p4525_p0 }
  0x33   : > { %p4533_p3 = pnand %p4532_p1, %p4526_p2 }
  0x35   : > { %4536 = shalt.err (!%p4533_p3)
}
  0x36   : > { %4280 = dma.hbm_to_vmem [thread:$0]  (!%p5034_p6), %s5900_s28, 32, %s445_s29, [#allocation6]  }
  0x37   : > { %s5902_s5 = sld [smem:[#allocation32_spill]] }
  0x3d   : > { %s4537_s23 = scalar_lea.hbm %s5902_s5, 64 }
  0x3e   : > { %p4538_p7 = scmp.ne.s32.totalorder %s5902_s5, %s4537_s23  ;;  %p4544_p1 = scmp.lt.u32.totalorder %s4537_s23, %s5902_s5 }
  0x40   : > { %p4540_p9 = pnand %p4538_p7, %p5048_p8 }
  0x42   : > { %p4541_p4 = pneg %p4540_p9 }
  0x44   : > { %p4546_p3 = pnand %p4544_p1, %p4541_p4 }
  0x46   : > { %4549 = shalt.err (!%p4546_p3)
}
  0x47   : > { %s4550_s29 = scalar_lea.vmem %s5030_s19, 64  ;;  %p4558_p13 = scmp.lt.s32.totalorder %s5030_s19, %s5030_s19 }
  0x48   : > { %p4551_p10 = scmp.ne.s32.totalorder %s5030_s19, %s4550_s29  ;;  %p4559_p0 = scmp.lt.s32.totalorder %s4550_s29, %s4550_s29 }
  0x4a   : > { %p4553_p11 = pnand %p4551_p10, %p5048_p8  ;;  %p4560_p2 = por %p4559_p0, %p4558_p13 }
  0x4c   : > { %p4554_p12 = pneg %p4553_p11 }
  0x4e   : > { %p4561_p5 = pnand %p4560_p2, %p4554_p12 }
  0x50   : > { %4564 = shalt.err (!%p4561_p5)
}
  0x51   : > { %s4882_s12 = smov 32   ;;  %s4883_s6 = smov 2  }
  0x52   : > { %4286 = dma.hbm_to_vmem [thread:$0]  (!%p5034_p6), %s5902_s5, 64, %s5030_s19, [#allocation9], %s4882_s12, %s4882_s12, %s4883_s6  }
  0x53   : > { %s4565_s23 = scalar_lea.hbm %s5846_s8, 32 }
  0x54   : > { %p4566_p7 = scmp.ne.s32.totalorder %s5846_s8, %s4565_s23  ;;  %p4572_p1 = scmp.lt.u32.totalorder %s4565_s23, %s5846_s8 }
  0x56   : > { %p4568_p9 = pnand %p4566_p7, %p5048_p8 }
  0x58   : > { %p4569_p4 = pneg %p4568_p9 }
  0x5a   : > { %p4574_p3 = pnand %p4572_p1, %p4569_p4 }
  0x5c   : > { %4577 = shalt.err (!%p4574_p3)
}
  0x5d   : > { %s4578_s15 = scalar_lea.vmem %s501_s21, 32  ;;  %p4586_p13 = scmp.lt.s32.totalorder %s501_s21, %s501_s21 }
  0x5e   : > { %p4579_p10 = scmp.ne.s32.totalorder %s501_s21, %s4578_s15  ;;  %p4587_p0 = scmp.lt.s32.totalorder %s4578_s15, %s4578_s15 }
  0x60   : > { %p4581_p11 = pnand %p4579_p10, %p5048_p8  ;;  %p4588_p2 = por %p4587_p0, %p4586_p13 }
  0x62   : > { %p4582_p12 = pneg %p4581_p11 }
  0x64   : > { %p4589_p5 = pnand %p4588_p2, %p4582_p12 }
  0x66   : > { %4592 = shalt.err (!%p4589_p5)
}
  0x67   : > { %s5867_s19 = smov 16   ;;  %s5869_s12 = smov 1  }
  0x68   : > { %4292 = dma.hbm_to_vmem [thread:$0]  (!%p5034_p6), %s5846_s8, 32, %s501_s21, [#allocation12], %s5867_s19, %s5867_s19, %s5869_s12  }
  0x69   : > { %s4886_s16 = smov [#allocation14]   ;;  %s4593_s20 = scalar_lea.hbm %s5848_s10, 1536 }
  0x6a   : > { %s526_s14 = sshll.u32 %s4886_s16, 4  ;;  %p4594_p7 = scmp.ne.s32.totalorder %s5848_s10, %s4593_s20  ;;  %s527_s14 = int_to_ptr.vmem [resolvable:$true] %s526_s14 }
  0x6b   : > { %p4600_p1 = scmp.lt.u32.totalorder %s4593_s20, %s5848_s10 }
  0x6c   : > { %p4596_p9 = pnand %p4594_p7, %p5048_p8 }
  0x6e   : > { %p4597_p4 = pneg %p4596_p9 }
  0x70   : > { %p4602_p3 = pnand %p4600_p1, %p4597_p4 }
  0x72   : > { %4605 = shalt.err (!%p4602_p3)
}
  0x73   : > { %s4606_s21 = scalar_lea.vmem %s527_s14, 1536  ;;  %p4614_p13 = scmp.lt.s32.totalorder %s527_s14, %s527_s14 }
  0x74   : > { %p4607_p10 = scmp.ne.s32.totalorder %s527_s14, %s4606_s21  ;;  %p4615_p0 = scmp.lt.s32.totalorder %s4606_s21, %s4606_s21 }
  0x76   : > { %p4609_p11 = pnand %p4607_p10, %p5048_p8  ;;  %p4616_p2 = por %p4615_p0, %p4614_p13 }
  0x78   : > { %p4610_p12 = pneg %p4609_p11 }
  0x7a   : > { %p4617_p5 = pnand %p4616_p2, %p4610_p12 }
  0x7c   : > { %4620 = shalt.err (!%p4617_p5)
}
  0x7d   : > { %s5871_s28 = smov 128   ;;  %s5872_s6 = smov 8  }
  0x7e   : > { %4298 = dma.hbm_to_vmem [thread:$0]  (!%p5034_p6), %s5848_s10, 1536, %s527_s14, [#allocation15], %s5871_s28, %s5871_s28, %s5872_s6  }
  0x7f   : > { %s4889_s17 = smov [#allocation7]   ;;  %s4890_s20 = smov [#allocation10]  }
  0x80   : > { %s458_s23 = sshll.u32 %s4889_s17, 4  ;;  %s487_s22 = sshll.u32 %s4890_s20, 4  ;;  %s459_s23 = int_to_ptr.vmem [resolvable:$true] %s458_s23  ;;  %s5130_s22 = int_to_ptr.vmem [resolvable:$true] %s487_s22 }
  0x81   : > { %s5903_s3 = sld [smem:[#allocation30_spill]] }
  0x87   : > { %s4621_s21 = scalar_lea.hbm %s5903_s3, 16 }
  0x88   : > { %p4622_p7 = scmp.ne.s32.totalorder %s5903_s3, %s4621_s21  ;;  %p4628_p1 = scmp.lt.u32.totalorder %s4621_s21, %s5903_s3 }
  0x8a   : > { %p4624_p9 = pnand %p4622_p7, %p5048_p8 }
  0x8c   : > { %p4625_p4 = pneg %p4624_p9 }
  0x8e   : > { %p4630_p3 = pnand %p4628_p1, %p4625_p4 }
  0x90   : > { %4633 = shalt.err (!%p4630_p3)
}
  0x91   : > { %s4634_s16 = scalar_lea.vmem %s459_s23, 16  ;;  %s4641_s17 = scalar_lea.vmem %s459_s23, 32 }
  0x92   : > { %p4635_p10 = scmp.ne.s32.totalorder %s459_s23, %s4634_s16  ;;  %p4642_p13 = scmp.lt.s32.totalorder %s459_s23, %s459_s23 }
  0x93   : > { %p4643_p0 = scmp.lt.s32.totalorder %s4641_s17, %s4634_s16 }
  0x94   : > { %p4637_p11 = pnand %p4635_p10, %p5048_p8 }
  0x95   : > { %p4644_p2 = por %p4643_p0, %p4642_p13 }
  0x96   : > { %p4638_p12 = pneg %p4637_p11 }
  0x98   : > { %p4645_p5 = pnand %p4644_p2, %p4638_p12 }
  0x9a   : > { %4648 = shalt.err (!%p4645_p5)
}
  0x9b   : > { %4283 = dma.hbm_to_vmem [thread:$0]  (!%p5034_p6), %s5903_s3, 16, %s459_s23, [#allocation6]  }
  0x9c   : > { %s4649_s15 = scalar_lea.hbm %s5845_s7, 32 }
  0x9d   : > { %p4650_p7 = scmp.ne.s32.totalorder %s5845_s7, %s4649_s15  ;;  %p4656_p1 = scmp.lt.u32.totalorder %s4649_s15, %s5845_s7 }
  0x9f   : > { %p4652_p9 = pnand %p4650_p7, %p5048_p8 }
  0xa1   : > { %p4653_p4 = pneg %p4652_p9 }
  0xa3   : > { %p4658_p3 = pnand %p4656_p1, %p4653_p4 }
  0xa5   : > { %4661 = shalt.err (!%p4658_p3)
}
  0xa6   : > { %s4662_s23 = scalar_lea.vmem %s5130_s22, 32  ;;  %p4670_p13 = scmp.lt.s32.totalorder %s5130_s22, %s5130_s22 }
  0xa7   : > { %p4663_p10 = scmp.ne.s32.totalorder %s5130_s22, %s4662_s23  ;;  %p4671_p0 = scmp.lt.s32.totalorder %s4662_s23, %s4662_s23 }
  0xa9   : > { %p4665_p11 = pnand %p4663_p10, %p5048_p8  ;;  %p4672_p2 = por %p4671_p0, %p4670_p13 }
  0xab   : > { %p4666_p12 = pneg %p4665_p11 }
  0xad   : > { %p4673_p5 = pnand %p4672_p2, %p4666_p12 }
  0xaf   : > { %4676 = shalt.err (!%p4673_p5)
}
  0xb0   : > { %s5904_s17 = smov 1   ;;  %s5905_s19 = smov 16  }
  0xb1   : > { %4289 = dma.hbm_to_vmem [thread:$0]  (!%p5034_p6), %s5845_s7, 32, %s5130_s22, [#allocation9], %s5905_s19, %s5905_s19, %s5904_s17  }
  0xb2   : > { %s4891_s29 = smov [#allocation13]   ;;  %s4892_s21 = smov [#allocation16]  }
  0xb3   : > { %s513_s15 = sshll.u32 %s4891_s29, 4  ;;  %s539_s5 = sshll.u32 %s4892_s21, 4  ;;  %s514_s15 = int_to_ptr.vmem [resolvable:$true] %s513_s15  ;;  %s5176_s5 = int_to_ptr.vmem [resolvable:$true] %s539_s5 }
  0xb4   : > { %s4677_s23 = scalar_lea.hbm %s5847_s9, 32 }
  0xb5   : > { %p4678_p7 = scmp.ne.s32.totalorder %s5847_s9, %s4677_s23  ;;  %p4684_p1 = scmp.lt.u32.totalorder %s4677_s23, %s5847_s9 }
  0xb7   : > { %p4680_p9 = pnand %p4678_p7, %p5048_p8 }
  0xb9   : > { %p4681_p4 = pneg %p4680_p9 }
  0xbb   : > { %p4686_p3 = pnand %p4684_p1, %p4681_p4 }
  0xbd   : > { %4689 = shalt.err (!%p4686_p3)
}
  0xbe   : > { %s4690_s20 = scalar_lea.vmem %s514_s15, 32  ;;  %p4698_p13 = scmp.lt.s32.totalorder %s514_s15, %s514_s15 }
  0xbf   : > { %p4691_p10 = scmp.ne.s32.totalorder %s514_s15, %s4690_s20  ;;  %p4699_p0 = scmp.lt.s32.totalorder %s4690_s20, %s4690_s20 }
  0xc1   : > { %p4693_p11 = pnand %p4691_p10, %p5048_p8  ;;  %p4700_p2 = por %p4699_p0, %p4698_p13 }
  0xc3   : > { %p4694_p12 = pneg %p4693_p11 }
  0xc5   : > { %p4701_p5 = pnand %p4700_p2, %p4694_p12 }
  0xc7   : > { %4704 = shalt.err (!%p4701_p5)
}
  0xc8   : > { %4295 = dma.hbm_to_vmem [thread:$0]  (!%p5034_p6), %s5847_s9, 32, %s514_s15, [#allocation12], %s5905_s19, %s5905_s19, %s5904_s17  }
  0xc9   : > { %s4705_s14 = scalar_lea.hbm %s5849_s11, 32 }
  0xca   : > { %p4706_p7 = scmp.ne.s32.totalorder %s5849_s11, %s4705_s14  ;;  %p4712_p1 = scmp.lt.u32.totalorder %s4705_s14, %s5849_s11 }
  0xcc   : > { %p4708_p9 = pnand %p4706_p7, %p5048_p8 }
  0xce   : > { %p4709_p4 = pneg %p4708_p9 }
  0xd0   : > { %p4714_p3 = pnand %p4712_p1, %p4709_p4 }
  0xd2   : > { %4717 = shalt.err (!%p4714_p3)
}
  0xd3   : > { %s4718_s15 = scalar_lea.vmem %s5176_s5, 32  ;;  %p4726_p13 = scmp.lt.s32.totalorder %s5176_s5, %s5176_s5 }
  0xd4   : > { %p4719_p10 = scmp.ne.s32.totalorder %s5176_s5, %s4718_s15  ;;  %p4727_p0 = scmp.lt.s32.totalorder %s4718_s15, %s4718_s15 }
  0xd6   : > { %p4721_p11 = pnand %p4719_p10, %p5048_p8  ;;  %p4728_p2 = por %p4727_p0, %p4726_p13 }
  0xd8   : > { %p4722_p12 = pneg %p4721_p11 }
  0xda   : > { %p4729_p5 = pnand %p4728_p2, %p4722_p12 }
  0xdc   : > { %4732 = shalt.err (!%p4729_p5)
}
  0xdd   : > { %4301 = dma.hbm_to_vmem [thread:$0]  (!%p5034_p6), %s5849_s11, 32, %s5176_s5, [#allocation15], %s5905_s19, %s5905_s19, %s5904_s17  }
  0xde   : > { %s4893_s6 = smov [#allocation17]   ;;  %s4733_s16 = scalar_lea.hbm %s5851_s13, 32 }
  0xdf   : > { %s555_s29 = sshll.u32 %s4893_s6, 4  ;;  %p4734_p7 = scmp.ne.s32.totalorder %s5851_s13, %s4733_s16  ;;  %s556_s29 = int_to_ptr.vmem [resolvable:$true] %s555_s29 }
  0xe0   : > { %p4740_p1 = scmp.lt.u32.totalorder %s4733_s16, %s5851_s13 }
  0xe1   : > { %p4736_p9 = pnand %p4734_p7, %p5048_p8 }
  0xe3   : > { %p4737_p4 = pneg %p4736_p9 }
  0xe5   : > { %p4742_p3 = pnand %p4740_p1, %p4737_p4 }
  0xe7   : > { %4745 = shalt.err (!%p4742_p3)
}
  0xe8   : > { %s4746_s5 = scalar_lea.vmem %s556_s29, 32  ;;  %p4754_p13 = scmp.lt.s32.totalorder %s556_s29, %s556_s29 }
  0xe9   : > { %p4747_p10 = scmp.ne.s32.totalorder %s556_s29, %s4746_s5  ;;  %p4755_p0 = scmp.lt.s32.totalorder %s4746_s5, %s4746_s5 }
  0xeb   : > { %p4749_p11 = pnand %p4747_p10, %p5048_p8  ;;  %p4756_p2 = por %p4755_p0, %p4754_p13 }
  0xed   : > { %p4750_p12 = pneg %p4749_p11 }
  0xef   : > { %p4757_p5 = pnand %p4756_p2, %p4750_p12 }
  0xf1   : > { %4760 = shalt.err (!%p4757_p5)
}
  0xf2   : > { %4304 = dma.hbm_to_vmem [thread:$0]  (!%p5034_p6), %s5851_s13, 32, %s556_s29, [#allocation18], %s5905_s19, %s5905_s19, %s5904_s17  }
  0xf3   : > { %s3540_s1 = sadd.s32 4294967294, %s4877_s27   ;;  %s5248_s18 = sadd.s32 1, %s4877_s27  }
  0xf4   : > { %s45_s6 = sadd.s32 1, %s4873_s26  ;;  %s42_s21 = ssub.s32 %s4877_s27, %s5248_s18 }
  0xf5   : > { %p52_p8 = scmp.ne.s32.totalorder %s4873_s26, %s4869_s25  ;;  %p43_p7 = scmp.eq.s32.totalorder %s42_s21, 0 }
  0xf6   : > { %p53_p9 = scmp.eq.s32.totalorder %s4877_s27, 0  ;;  %p58_p4 = scmp.ne.s32.totalorder %s4869_s25, %s4865_s24 }
  0xf7   : > { %p418_p1 = scmp.eq.s32.totalorder %s5018_s0, 1  ;;  %p5906_p10 = scmp.eq.s32.totalorder %s5018_s0, 0 }
  0xf8   : > { %s5260_s14 = scalar_select %p43_p7, %s4873_s26, %s45_s6  }
  0xf9   : > { %p54_p3 = por %p53_p9, %p52_p8  ;;  %p5264_p11 = por %p5906_p10, %p58_p4 }
  0xfa   : > { %p5268_p6 = por %p418_p1, %p52_p8  ;;  %p424_p12 = scmp.eq.s32.totalorder %s3540_s1, 1 }
  0xfb   : > { %p4322_p13 = scmp.lt.s32.totalorder %s4877_s27, 2  ;;  %s578_s19 = sand.u32 1, %s4873_s26  }
  0xfc   : > { %s5908_s17 = scalar_select %p5268_p6, 1, 0 }
  0xfd   : > { %p5274_p0 = por %p424_p12, %p58_p4  ;;  %s3552_s23 = sshll.u32 %s578_s19, 4 }
  0xfe   : > { %s3683_s12 = sshll.u32 %s4877_s27, 8  ;;  %s5910_s5 = sld [smem:[#allocation27_spill]] }
  0xff   : > { %s5909_s29 = scalar_select %p5274_p0, 1, 0 }
 0x100   : > { %s582_s28 = scalar_lea.vmem [#allocation2], %s3552_s23  ;;  %p5284_p2 = pnand %p4322_p13, %p54_p3 }
 0x101   : > { %s589_s6 = sshll.u32 %s582_s28, 4  ;;  %s5290_s21 = scalar_lea.sflag [#allocation3], %s578_s19  ;;  %s5288_s6 = int_to_ptr.vmem [resolvable:$true] %s589_s6 }
 0x102   : > { %p4763_p8 = pneg %p5284_p2 }
 0x104   : > { %s5282_s20 = scalar_lea.hbm %s5910_s5, %s3683_s12  ;;  %s4766_s22 = scalar_lea.hbm %s5910_s5, 512 }
 0x105   : > { %s4761_s3 = scalar_lea.hbm %s5282_s20, 256  ;;  %p4767_p4 = scmp.lt.u32.totalorder %s5282_s20, %s5910_s5 }
 0x106   : > { %p4762_p5 = scmp.ne.s32.totalorder %s5282_s20, %s4761_s3  ;;  %p4768_p1 = scmp.lt.u32.totalorder %s4766_s22, %s4761_s3 }
 0x107   : > { %p4770_p10 = scmp.lt.u32.totalorder %s4761_s3, %s5282_s20 }
 0x108   : > { %p4764_p7 = pnand %p4763_p8, %p4762_p5  ;;  %p4769_p3 = por %p4768_p1, %p4767_p4 }
 0x10a   : > { %p4765_p9 = pneg %p4764_p7  ;;  %p4771_p12 = por %p4770_p10, %p4769_p3 }
 0x10c   : > { %p4772_p13 = pnand %p4771_p12, %p4765_p9 }
 0x10e   : > { %4775 = shalt.err (!%p4772_p13)
}
 0x10f   : > { %s4776_s19 = scalar_lea.vmem %s5288_s6, 256  ;;  %s4894_s23 = smov [#allocation2]  }
 0x110   : > { %p4777_p5 = scmp.ne.s32.totalorder %s5288_s6, %s4776_s19  ;;  %s4781_s12 = sshll.u32 %s4894_s23, 4  ;;  %s4782_s12 = int_to_ptr.vmem [resolvable:$false] %s4781_s12 }
 0x111   : > { %s4783_s15 = scalar_lea.vmem %s4782_s12, 512  ;;  %p4784_p6 = scmp.lt.s32.totalorder %s5288_s6, %s4782_s12 }
 0x112   : > { %p4779_p7 = pnand %p4777_p5, %p4763_p8  ;;  %p4785_p4 = scmp.lt.s32.totalorder %s4783_s15, %s4776_s19 }
 0x114   : > { %p4780_p0 = pneg %p4779_p7  ;;  %p4786_p1 = por %p4785_p4, %p4784_p6 }
 0x116   : > { %p4787_p3 = pnand %p4786_p1, %p4780_p0 }
 0x118   : > { %4790 = shalt.err (!%p4787_p3)
}
 0x119   : > { %s5912_s3 = smov 8   ;;  %s5913_s22 = smov 128  }
 0x11a   : > { %4308 = dma.hbm_to_vmem [thread:$0]  (!%p5284_p2), %s5282_s20, 256, %s5288_s6, %s5290_s21, %s5913_s22, %s5913_s22, %s5912_s3  }
 0x11b   : > { %p5914_p8 = scmp.ne.s32.totalorder %s5898_s30, 0 }
 0x11c   : > { %s5324_s28 = sand.u32 (!%p5914_p8), 1, %s4869_s25  }
 0x11d   : > { %601 = sbr.rel (%p5914_p8) target bundleno = 6061 (0x17ad), region = 88  ;;  %s5874_s19 = sshll.u32 (!%p5914_p8), %s5324_s28, 4 }
 0x11e   : > { %s604_s23 = scalar_lea.sflag (!%p5914_p8), [#allocation3], %s5324_s28  ;;  %s607_s1 = scalar_lea.vmem (!%p5914_p8), [#allocation2], %s5874_s19 }
 0x124   : > { %4836 = dma.done.wait (%p5264_p11), %s604_s23, 256  }
 0x125   : > { %4838 = vsyncadd (%p5264_p11), %s604_s23, 4294967040  ;;  %p5915_p6 = scmp.eq.s32.totalorder %s5018_s0, 0 }
 0x127   : > { %4840 = dma.done.wait (%p5915_p6), [#allocation6], 48   ;;  %p5916_p0 = pmov %p5915_p6 }
 0x129   : > { %4842 = vsyncadd (%p5916_p0), [#allocation6], 4294967248  ;;  %p5917_p2 = pmov %p5916_p0 }
 0x12a   : > { %p5918_p9 = pmov %p5916_p0 }
 0x12b   : > { %4844 = dma.done.wait (%p5917_p2), [#allocation9], 96  }
 0x12c   : > { %4846 = vsyncadd (%p5918_p9), [#allocation9], 4294967200  ;;  %p5919_p10 = pmov %p5916_p0 }
 0x12d   : > { %p5920_p12 = pmov %p5916_p0 }
 0x12e   : > { %4848 = dma.done.wait (%p5919_p10), [#allocation12], 64  }
 0x12f   : > { %4850 = vsyncadd (%p5920_p12), [#allocation12], 4294967232  ;;  %p5921_p11 = pmov %p5916_p0 }
 0x130   : > { %p5922_p13 = pmov %p5916_p0 }
 0x131   : > { %4852 = dma.done.wait (%p5921_p11), [#allocation15], 1568  }
 0x132   : > { %4854 = vsyncadd (%p5922_p13), [#allocation15], 4294965728  ;;  %p5923_p5 = pmov %p5916_p0 }
 0x133   : > { %p5924_p7 = pmov %p5916_p0 }
 0x134   : > { %4856 = dma.done.wait (%p5923_p5), [#allocation18], 32  }
 0x135   : > { %4858 = vsyncadd (%p5924_p7), [#allocation18], 4294967264  ;;  %vm698_vm0 = vcmask 392192   ;;  %v694_v0 = vld [vmem:[%s607_s1] sm:$0xff]  ;;  %v695_v1 = vld [vmem:[%s607_s1 + $0x8] sm:$0xff]  ;;  %s5925_s4 = sld [smem:[#allocation31_spill]]  ;;  %v742_v49 = vlaneseq }
 0x136   : > { %v699_v2 = vsel %vm698_vm0, %v694_v0, 0.0  ;;  %v702_v3 = vsel %vm698_vm0, %v695_v1, 0.0  ;;  %v4895_v27 = vmov 0.0   ;;  %s5926_s2 = sld [smem:[#allocation29_spill]]  ;;  %v3568_v42 = vld [vmem:[#allocation7] ss:$0 sm:$0xff] }
 0x137   : > { %700 = vadd.xlane.f32.xlu0 %v699_v2  ;;  %855 = vmatprep.mubr.f32.mxu0 %v4895_v27  ;;  %v5408_v50 = vshrl.u32 %v742_v49, 7  ;;  %v773_v52 = vld [vmem:[#allocation8] sm:$0x3]  ;;  %vm882_vm1 = vcmask 130048   ;;  %s5883_s21 = smov 64   ;;  %s5882_s12 = smov 80  }
 0x138   : > { %s5878_s15 = smov 112   ;;  %s5877_s3 = smov 48   ;;  %vm5434_vm2 = vmpackc.low %vm882_vm1, %vm882_vm1  ;;  %vm1886_vm6 = vcmask 785408  }
 0x139   : > { %v5411_v51 = vsub.s32 0, %v5408_v50  ;;  %v781_v54 = vsub.s32 1, %v5408_v50  ;;  %s5880_s22 = smov 96   ;;  %s3684_s23 = scalar_lea.vmem [#allocation5], %s4877_s27 }
 0x13a   : > { %s5875_s1 = smov 32   ;;  %s5876_s30 = smov 16  }
 0x13b   : > { %703 = vadd.xlane.f32.xlu0 %v702_v3  ;;  %v762_v14 = vld [vmem:[%s5925_s4 + $0x8] sm:$0xff]  ;;  %v764_v15 = vld [vmem:[%s5925_s4 + $0x18] sm:$0xff]  ;;  %v761_v17 = vld [vmem:[%s5925_s4] sm:$0xff]  ;;  %v778_v53 = vrot.slane %v773_v52, %v5411_v51  ;;  %v782_v58 = vrot.slane %v773_v52, %v781_v54  ;;  %s5929_s6 = sld [smem:[#allocation33_spill]]  ;;  %s5930_s20 = sld [smem:[#allocation34_spill]] }
 0x13c   : > { %v4037_v16 = vpack.c.bf16 %v764_v15, %v762_v14  ;;  %v763_v18 = vld [vmem:[%s5925_s4 + $0x10] sm:$0xff]  ;;  %v766_v20 = vld [vmem:[%s5925_s4 + $0x28] sm:$0xff]  ;;  %v768_v21 = vld [vmem:[%s5925_s4 + $0x38] sm:$0xff]  ;;  %s5932_s19 = sld [smem:[#allocation36_spill]]  ;;  %s5939_s16 = smov 32  }
 0x13d   : > { %v4039_v19 = vpack.c.bf16 %v763_v18, %v761_v17  ;;  %v765_v22 = vld [vmem:[%s5925_s4 + $0x20] sm:$0xff]  ;;  %v4041_v23 = vpack.c.bf16 %v768_v21, %v766_v20  ;;  %v767_v24 = vld [vmem:[%s5925_s4 + $0x30] sm:$0xff]  ;;  %v770_v25 = vld [vmem:[%s5925_s4 + $0x48] sm:$0xff]  ;;  %s5942_s5 = sld [smem:[#allocation38_spill]]  ;;  %p5943_p1 = scmp.ne.s32.totalorder %s5908_s17, 0 }
 0x13e   : > { %4038 = vmatprep.subr.bf16.mxu0 %v4037_v16  ;;  %v772_v26 = vld [vmem:[%s5925_s4 + $0x58] sm:$0xff]  ;;  %v4043_v28 = vpack.c.bf16 %v767_v24, %v765_v22  ;;  %v769_v30 = vld [vmem:[%s5925_s4 + $0x40] sm:$0xff]  ;;  %v771_v31 = vld [vmem:[%s5925_s4 + $0x50] sm:$0xff]  ;;  %v744_v22 = vadd.s32 8, %v5408_v50 }
 0x13f   : > { %4040 = vmatpush1.bf16.msra.mxu0 %v4039_v19  ;;  %v4045_v29 = vpack.c.bf16 %v772_v26, %v770_v25  ;;  %v4047_v32 = vpack.c.bf16 %v771_v31, %v769_v30  ;;  %v3567_v40 = vld [vmem:[%s5926_s2] ss:$0 sm:$0xff]  ;;  %v3686_v21 = vld [vmem:[%s3684_s23 - $0x1] sm:$0x1]  ;;  %v4901_v26 = vmov -1e+09  }
 0x140   : > { %4042 = vmatprep.subr.bf16.mxu0 %v4041_v23  ;;  %vm753_vm3 = vcmp.ne.f32.partialorder %v3686_v21, 0.0  ;;  %v746_v23 = vand.u32 127, %v742_v49  ;;  %s5940_s2 = sld [smem:[#allocation37_spill]] }
 0x141   : > { %v754_v24 = vsel %vm753_vm3, -1e+09, %v4895_v27 }
 0x142   : > { %vm750_vm4 = vcmp.ge.s32.totalorder %v744_v22, %v746_v23  ;;  %vm749_vm5 = vcmp.ge.s32.totalorder %v5408_v50, %v746_v23  ;;  %v758_v25 = vrot.slane %v754_v24, %v5411_v51 }
 0x143   : > { %4044 = vmatpush1.bf16.msra.mxu0 %v4043_v28  ;;  %v752_v28 = vsel %vm750_vm4, 0.0, %v4901_v26 }
 0x144   : > { %4046 = vmatprep.subr.bf16.mxu0 %v4045_v29  ;;  %v751_v29 = vsel %vm749_vm5, 0.0, %v4901_v26  ;;  %v5461_v30 = vadd.f32 %v758_v25, %v752_v28 }
 0x145   : > { %v5463_v31 = vadd.f32 %v758_v25, %v751_v29 }
 0x147   : > { %4048 = vmatpush1.bf16.msra.mxu0 %v4047_v32 }
 0x1c4   : > { %v701_v4 = vpop.xlane.xlu0 %700 }
 0x1c5   : > { %v706_v5 = vmul.f32 0.020833334, %v701_v4 }
 0x1c7   : > { %v708_v6 = vsub.f32 %v694_v0, %v706_v5 }
 0x1c8   : > { %v704_v7 = vpop.xlane.xlu0 %703 }
 0x1c9   : > { %v707_v8 = vmul.f32 0.020833334, %v704_v7  ;;  %v710_v9 = vmul.f32 %v708_v6, %v708_v6 }
 0x1cb   : > { %v709_v10 = vsub.f32 %v695_v1, %v707_v8  ;;  %v712_v11 = vsel %vm698_vm0, %v710_v9, 0.0 }
 0x1cc   : > { %713 = vadd.xlane.f32.xlu1 %v712_v11 }
 0x1cd   : > { %v711_v12 = vmul.f32 %v709_v10, %v709_v10 }
 0x1cf   : > { %v715_v13 = vsel %vm698_vm0, %v711_v12, 0.0 }
 0x1d0   : > { %716 = vadd.xlane.f32.xlu1 %v715_v13 }
 0x259   : > { %v714_v33 = vpop.xlane.xlu1 %713 }
 0x25a   : > { %v718_v34 = vmul.f32 0.020833334, %v714_v33 }
 0x25c   : > { %v720_v35 = vadd.f32 1e-05, %v718_v34 }
 0x25d   : > { %v717_v36 = vpop.xlane.xlu1 %716 }
 0x25e   : > { %4441 = vrsqrt.f32 %v720_v35  ;;  %v719_v37 = vmul.f32 0.020833334, %v717_v36 }
 0x260   : > { %v721_v38 = vadd.f32 1e-05, %v719_v37 }
 0x262   : > { %4443 = vrsqrt.f32 %v721_v38 }
 0x268   : > { %v4442_v39 = vpop.eup %4441 }
 0x269   : > { %v724_v41 = vmul.f32 %v4442_v39, %v708_v6 }
 0x26b   : > { %v732_v43 = vmul.f32 %v3567_v40, %v724_v41 }
 0x26c   : > { %v4444_v44 = vpop.eup %4443 }
 0x26d   : > { %v5398_v45 = vadd.f32 %v3568_v42, %v732_v43  ;;  %v725_v46 = vmul.f32 %v4444_v44, %v709_v10 }
 0x26f   : > { %3570 = vmatmul.mubr.msk.f32.vlgmr.msra.gmra.mrb[0].mxu0 %vm698_vm0, %v5398_v45  ;;  %v733_v47 = vmul.f32 %v3567_v40, %v725_v46 }
 0x270   : > { %861 = vmatprep.mubr.f32.mxu0 %v4895_v27 }
 0x271   : > { %v5403_v48 = vadd.f32 %v3568_v42, %v733_v47 }
 0x273   : > { %3571 = vmatmul.mubr.msk.f32.gmra.mrb[2].mxu0 %vm698_vm0, %v5403_v48 }
 0x342   : > { %v857_v55 = vpop.f32.mrb[0].mxu0 }
 0x343   : > { %v858_v56 = vadd.f32 %v857_v55, %v778_v53  ;;  %v859_v57 = vpop.f32.mrb[1].mxu0 }
 0x344   : > { %v860_v63 = vadd.f32 %v859_v57, %v782_v58 }
 0x345   : > { %v874_v59 = vmul.f32 0.25, %v858_v56 }
 0x346   : > { %v863_v60 = vpop.f32.mrb[2].mxu0 }
 0x347   : > { %v864_v61 = vadd.f32 %v863_v60, %v778_v53  ;;  %v865_v62 = vpop.f32.mrb[3].mxu0  ;;  %3816 = vmatprep.mubr.msk.f32.mxu1 %vm882_vm1, %v874_v59 }
 0x348   : > { %v866_v0 = vadd.f32 %v865_v62, %v782_v58 }
 0x349   : > { %v5418_v1 = vpack.i.bf16 %v864_v61, %v858_v56  ;;  %v875_v3 = vmul.f32 0.25, %v864_v61 }
 0x34a   : > { %v5420_v2 = vpack.c.bf16 %v866_v0, %v860_v63 }
 0x34b   : > { %4397 = vrot.lane.b32.xlu1 %v5418_v1, %s5883_s21  ;;  %4392 = vrot.lane.b32.xlu0 %v5418_v1, %s5882_s12  ;;  %s5935_s21 = smov 96   ;;  %s5936_s12 = smov 112  }
 0x34f   : > { %1077 = vrot.lane.b32.xlu1 %v874_v59, %s5878_s15  ;;  %4402 = vrot.lane.b32.xlu0 %v5418_v1, %s5877_s3  ;;  %s5937_s3 = smov 48  }
 0x353   : > { %1441 = vrot.lane.b32.xlu0 %v875_v3, %s5880_s22  ;;  %1079 = vrot.lane.b32.xlu1 %v875_v3, %s5878_s15  ;;  %s5933_s15 = smov 64  }
 0x357   : > { %1439 = vrot.lane.b32.xlu1 %v874_v59, %s5880_s22  ;;  %s5934_s22 = smov 80  }
 0x3bd   : > { %v4398_v4 = vpop.permute.xlu1 %4397  ;;  %v4393_v5 = vpop.permute.xlu0 %4392 }
 0x3be   : > { %v4400_v6 = vunpack.i.h.bf16 %v4398_v4  ;;  %v4399_v7 = vunpack.i.l.bf16 %v4398_v4  ;;  %v4395_v8 = vunpack.i.h.bf16 %v4393_v5  ;;  %v4394_v9 = vunpack.i.l.bf16 %v4393_v5 }
 0x3c0   : > { %v4059_v11 = vpack.c.bf16 %v4400_v6, %v4399_v7  ;;  %v4049_v12 = vpack.c.bf16 %v4395_v8, %v4394_v9 }
 0x3c1   : > { %v1078_v13 = vpop.permute.xlu1 %1077  ;;  %v4403_v14 = vpop.permute.xlu0 %4402 }
 0x3c2   : > { %v4405_v15 = vunpack.i.h.bf16 %v4403_v14  ;;  %v4404_v16 = vunpack.i.l.bf16 %v4403_v14  ;;  %4051 = vmatprep.subr.msk.bf16.mxu1 %vm5434_vm2, %v4049_v12  ;;  %4061 = vmatprep.subr.msk.bf16.mxu0 %vm5434_vm2, %v4059_v11 }
 0x3c3   : > { %3830 = vmatprep.mubr.msk.f32.mxu0 %vm882_vm1, %v1078_v13  ;;  %4054 = vmatpush3.bf16.xpose.msk.msra.mxu1 %vm5434_vm2, %v4049_v12 }
 0x3c4   : > { %v4077_v17 = vpack.c.bf16 %v4405_v15, %v4404_v16  ;;  %4064 = vmatpush3.bf16.xpose.msk.msra.mxu0 %vm5434_vm2, %v4059_v11 }
 0x3c5   : > { %v1080_v18 = vpop.permute.xlu1 %1079  ;;  %v1442_v20 = vpop.permute.xlu0 %1441 }
 0x3c6   : > { %4079 = vmatprep.subr.msk.bf16.mxu0 %vm5434_vm2, %v4077_v17 }
 0x3c9   : > { %v1440_v19 = vpop.permute.xlu1 %1439 }
 0x3ca   : > { %3817 = vmatmul.mubr.msk.f32.vlgmr.msra.gmra.mrb[0].mxu1 %vm882_vm1, %v875_v3 }
 0x3cb   : > { %3831 = vmatmul.mubr.msk.f32.vlgmr.msra.gmra.mrb[4].mxu0 %vm882_vm1, %v1080_v18 }
 0x3cc   : > { %4082 = vmatpush3.bf16.xpose.msk.msra.mxu0 %vm5434_vm2, %v4077_v17  ;;  %3858 = vmatprep.mubr.msk.f32.mxu0 %vm882_vm1, %v1440_v19 }
 0x3d3   : > { %3859 = vmatmul.mubr.msk.f32.vlgmr.msra.gmra.mrb[6].mxu0 %vm882_vm1, %v1442_v20 }
 0x49d   : > { %v3818_v32 = vpop.f32.mrb[0].mxu1 }
 0x49e   : > { %v965_v33 = vadd.f32 %v3818_v32, %v5461_v30  ;;  %v3832_v34 = vpop.f32.mrb[4].mxu0  ;;  %v959_v35 = vpop.f32.mrb[1].mxu1 }
 0x49f   : > { %v960_v36 = vadd.f32 %v959_v35, %v5463_v31  ;;  %v1159_v37 = vpop.f32.mrb[5].mxu0  ;;  %v1165_v41 = vadd.f32 %v3832_v34, %v5461_v30 }
 0x4a0   : > { %v1160_v38 = vadd.f32 %v1159_v37, %v5463_v31  ;;  %v971_v39 = vsel %vm882_vm1, %v965_v33, -inf }
 0x4a1   : > { %972 = vmax.xlane.f32.xlu0 %v971_v39  ;;  %v968_v40 = vsel %vm882_vm1, %v960_v36, -inf  ;;  %v1171_v46 = vsel %vm882_vm1, %v1165_v41, -inf }
 0x4a2   : > { %969 = vmax.xlane.f32.xlu1 %v968_v40  ;;  %v1168_v42 = vsel %vm882_vm1, %v1160_v38, -inf }
 0x4a5   : > { %1169 = vmax.xlane.f32.xlu0 %v1168_v42 }
 0x4a6   : > { %v3860_v43 = vpop.f32.mrb[6].mxu0 }
 0x4a7   : > { %v1521_v44 = vpop.f32.mrb[7].mxu0  ;;  %v1527_v11 = vadd.f32 %v3860_v43, %v5461_v30 }
 0x4a8   : > { %v1522_v9 = vadd.f32 %v1521_v44, %v5463_v31 }
 0x4a9   : > { %1172 = vmax.xlane.f32.xlu0 %v1171_v46  ;;  %v1533_v13 = vsel %vm882_vm1, %v1527_v11, -inf }
 0x4aa   : > { %v1530_v12 = vsel %vm882_vm1, %v1522_v9, -inf }
 0x52e   : > { %v973_v47 = vpop.xlane.xlu0 %972 }
 0x52f   : > { %v975_v49 = vsub.f32 %v965_v33, %v973_v47  ;;  %v970_v52 = vpop.xlane.xlu1 %969  ;;  %v870_v47 = vld [vmem:[%s5929_s6 + $0x10] sm:$0xff] }
 0x530   : > { %v974_v53 = vsub.f32 %v960_v36, %v970_v52 }
 0x531   : > { %v978_v55 = vmul.f32 1.442695, %v975_v49  ;;  %v871_v49 = vld [vmem:[%s5929_s6 + $0x18] sm:$0xff] }
 0x532   : > { %v976_v56 = vmul.f32 1.442695, %v974_v53  ;;  %v1170_v57 = vpop.xlane.xlu0 %1169  ;;  %v4069_v52 = vpack.c.bf16 %v871_v49, %v870_v47  ;;  %v868_v53 = vld [vmem:[%s5929_s6] sm:$0xff]  ;;  %v1873_v49 = vld [vmem:[%s5930_s20 + $0x30] sm:$0xff] }
 0x533   : > { %4445 = vpow2.f32 %v978_v55  ;;  %v1174_v58 = vsub.f32 %v1160_v38, %v1170_v57  ;;  %v869_v55 = vld [vmem:[%s5929_s6 + $0x8] sm:$0xff] }
 0x534   : > { %4447 = vpow2.f32 %v976_v56  ;;  %v4073_v56 = vpack.c.bf16 %v869_v55, %v868_v53  ;;  %v1875_v55 = vld [vmem:[%s5930_s20 + $0x40] sm:$0xff] }
 0x535   : > { %v1176_v59 = vmul.f32 1.442695, %v1174_v58 }
 0x536   : > { %v1173_v60 = vpop.xlane.xlu0 %1172 }
 0x537   : > { %4449 = vpow2.f32 %v1176_v59  ;;  %v1175_v61 = vsub.f32 %v1165_v41, %v1173_v60 }
 0x539   : > { %v1178_v62 = vmul.f32 1.442695, %v1175_v61 }
 0x53b   : > { %4451 = vpow2.f32 %v1178_v62 }
 0x53d   : > { %v4446_v63 = vpop.eup %4445 }
 0x53e   : > { %v4448_v0 = vpop.eup %4447  ;;  %v983_v3 = vsel %vm882_vm1, %v4446_v63, 0.0 }
 0x53f   : > { %984 = vadd.xlane.f32.xlu0 %v983_v3  ;;  %v980_v4 = vsel %vm882_vm1, %v4448_v0, 0.0 }
 0x540   : > { %981 = vadd.xlane.f32.xlu1 %v980_v4 }
 0x541   : > { %v4450_v5 = vpop.eup %4449 }
 0x542   : > { %v1180_v6 = vsel %vm882_vm1, %v4450_v5, 0.0 }
 0x544   : > { %1181 = vadd.xlane.f32.xlu1 %v1180_v6 }
 0x545   : > { %v4452_v7 = vpop.eup %4451 }
 0x546   : > { %v1183_v8 = vsel %vm882_vm1, %v4452_v7, 0.0 }
 0x547   : > { %1184 = vadd.xlane.f32.xlu0 %v1183_v8 }
 0x555   : > { %4407 = vrot.lane.b32.xlu1 %v5418_v1, %s5875_s1  ;;  %s5938_s1 = smov 16  }
 0x55d   : > { %4412 = vrot.lane.b32.xlu0 %v5418_v1, %s5876_s30  ;;  %s5931_s30 = sld [smem:[#allocation35_spill]] }
 0x579   : > { %1531 = vmax.xlane.f32.xlu1 %v1530_v12 }
 0x57c   : > { %1534 = vmax.xlane.f32.xlu0 %v1533_v13 }
 0x5cc   : > { %v985_v14 = vpop.xlane.xlu0 %984 }
 0x5cd   : > { %v982_v15 = vpop.xlane.xlu1 %981 }
 0x5ce   : > { %4453 = vrcp.f32 %v982_v15 }
 0x5cf   : > { %4455 = vrcp.f32 %v985_v14 }
 0x5d1   : > { %v1182_v16 = vpop.xlane.xlu1 %1181 }
 0x5d2   : > { %4457 = vrcp.f32 %v1182_v16 }
 0x5d4   : > { %v1185_v17 = vpop.xlane.xlu0 %1184 }
 0x5d5   : > { %4459 = vrcp.f32 %v1185_v17  ;;  %v4408_v18 = vpop.permute.xlu1 %4407 }
 0x5d6   : > { %v4410_v1 = vunpack.i.h.bf16 %v4408_v18  ;;  %v4409_v19 = vunpack.i.l.bf16 %v4408_v18 }
 0x5d8   : > { %v4454_v20 = vpop.eup %4453  ;;  %v4055_v21 = vpack.c.bf16 %v4410_v1, %v4409_v19  ;;  %v4413_v22 = vpop.permute.xlu0 %4412 }
 0x5d9   : > { %v4456_v23 = vpop.eup %4455  ;;  %v4415_v24 = vunpack.i.h.bf16 %v4413_v22  ;;  %v4414_v25 = vunpack.i.l.bf16 %v4413_v22  ;;  %v988_v26 = vmul.f32 %v4454_v20, %v4448_v0  ;;  %v873_v0 = vld [vmem:[%s5929_s6 + $0x28] sm:$0xff] }
 0x5da   : > { %4056 = vmatprep.subr.bf16.mxu1 %v4055_v21  ;;  %v989_v32 = vmul.f32 %v4456_v23, %v4446_v63  ;;  %v872_v63 = vld [vmem:[%s5929_s6 + $0x20] sm:$0xff] }
 0x5db   : > { %v4065_v28 = vpack.c.bf16 %v4415_v24, %v4414_v25  ;;  %4058 = vmatpush3.bf16.msra.mxu1 %v4055_v21  ;;  %3823 = vmatprep.mubr.msk.f32.mxu1 %vm882_vm1, %v988_v26  ;;  %v4087_v4 = vpack.c.bf16 %v873_v0, %v872_v63 }
 0x5dc   : > { %v4458_v29 = vpop.eup %4457 }
 0x5dd   : > { %4066 = vmatprep.subr.bf16.mxu1 %v4065_v28  ;;  %v1188_v33 = vmul.f32 %v4458_v29, %v4450_v5 }
 0x5de   : > { %3824 = vmatmul.mubr.msk.f32.vlgmr.msra.gmra.mrb[2].mxu1 %vm882_vm1, %v989_v32  ;;  %v1773_v32 = vld [vmem:[#allocation14 + $0x10] sm:$0xff] }
 0x5df   : > { %v4460_v34 = vpop.eup %4459  ;;  %4068 = vmatpush3.bf16.msra.mxu1 %v4065_v28  ;;  %3837 = vmatprep.mubr.msk.f32.mxu1 %vm882_vm1, %v1188_v33  ;;  %v1772_v28 = vld [vmem:[#allocation14 + $0x8] sm:$0xff]  ;;  %v1774_v33 = vld [vmem:[#allocation14 + $0x18] sm:$0xff] }
 0x5e0   : > { %v1189_v35 = vmul.f32 %v4460_v34, %v4452_v7  ;;  %4070 = vmatprep.subr.bf16.mxu1 %v4069_v52  ;;  %v4095_v34 = vpack.c.bf16 %v1774_v33, %v1773_v32 }
 0x5e2   : > { %3838 = vmatmul.mubr.msk.f32.vlgmr.msra.gmra.mrb[4].mxu1 %vm882_vm1, %v1189_v35  ;;  %v1775_v35 = vld [vmem:[#allocation14 + $0x20] sm:$0xff] }
 0x5e3   : > { %4072 = vmatpush3.bf16.msra.mxu1 %v4069_v52  ;;  %v1874_v52 = vld [vmem:[%s5930_s20 + $0x38] sm:$0xff] }
 0x5e4   : > { %4074 = vmatprep.subr.bf16.mxu1 %v4073_v56  ;;  %v4115_v53 = vpack.c.bf16 %v1874_v52, %v1873_v49  ;;  %v3612_v49 = vld [vmem:[%s5925_s4 + $0x88] sm:$0xff]  ;;  %v3614_v52 = vld [vmem:[%s5925_s4 + $0x98] sm:$0xff] }
 0x606   : > { %v1532_v36 = vpop.xlane.xlu1 %1531 }
 0x607   : > { %v1536_v37 = vsub.f32 %v1522_v9, %v1532_v36  ;;  %v1776_v36 = vld [vmem:[#allocation14 + $0x28] sm:$0xff] }
 0x609   : > { %v1538_v38 = vmul.f32 1.442695, %v1536_v37  ;;  %v1535_v39 = vpop.xlane.xlu0 %1534  ;;  %v4099_v37 = vpack.c.bf16 %v1776_v36, %v1775_v35 }
 0x60a   : > { %v1537_v40 = vsub.f32 %v1527_v11, %v1535_v39  ;;  %v3596_v11 = vld [vmem:[#allocation10] ss:$0 sm:$0xff] }
 0x60b   : > { %4461 = vpow2.f32 %v1538_v38  ;;  %v1867_v38 = vld [vmem:[%s5930_s20] sm:$0xff]  ;;  %v1868_v39 = vld [vmem:[%s5930_s20 + $0x8] sm:$0xff] }
 0x60c   : > { %v1540_v41 = vmul.f32 1.442695, %v1537_v40  ;;  %v1869_v40 = vld [vmem:[%s5930_s20 + $0x10] sm:$0xff] }
 0x60e   : > { %4463 = vpow2.f32 %v1540_v41  ;;  %v4103_v41 = vpack.c.bf16 %v1868_v39, %v1867_v38 }
 0x615   : > { %v4462_v42 = vpop.eup %4461 }
 0x616   : > { %v1542_v43 = vsel %vm882_vm1, %v4462_v42, 0.0 }
 0x617   : > { %1543 = vadd.xlane.f32.xlu1 %v1542_v43 }
 0x618   : > { %v4464_v44 = vpop.eup %4463 }
 0x619   : > { %v1545_v46 = vsel %vm882_vm1, %v4464_v44, 0.0 }
 0x61a   : > { %1546 = vadd.xlane.f32.xlu0 %v1545_v46  ;;  %v1872_v46 = vld [vmem:[%s5930_s20 + $0x28] sm:$0xff] }
 0x6a4   : > { %v1544_v57 = vpop.xlane.xlu1 %1543 }
 0x6a5   : > { %4465 = vrcp.f32 %v1544_v57 }
 0x6a7   : > { %v1547_v59 = vpop.xlane.xlu0 %1546 }
 0x6a8   : > { %4467 = vrcp.f32 %v1547_v59 }
 0x6af   : > { %v4466_v3 = vpop.eup %4465 }
 0x6b0   : > { %v1550_v6 = vmul.f32 %v4466_v3, %v4462_v42  ;;  %v1870_v42 = vld [vmem:[%s5930_s20 + $0x18] sm:$0xff]  ;;  %v3597_v3 = vld [vmem:[#allocation11] ss:$0 sm:$0xff] }
 0x6b1   : > { %v3825_v58 = vpop.f32.mrb[2].mxu1  ;;  %v4107_v43 = vpack.c.bf16 %v1870_v42, %v1869_v40  ;;  %v3610_v42 = vld [vmem:[%s5925_s4 + $0x78] sm:$0xff] }
 0x6b2   : > { %v1068_v60 = vpop.f32.mrb[3].mxu1  ;;  %v4468_v5 = vpop.eup %4467 }
 0x6b3   : > { %v1551_v7 = vmul.f32 %v4468_v5, %v4464_v44  ;;  %v1871_v44 = vld [vmem:[%s5930_s20 + $0x20] sm:$0xff] }
 0x6b4   : > { %v4111_v47 = vpack.c.bf16 %v1872_v46, %v1871_v44  ;;  %v3607_v44 = vld [vmem:[%s5925_s4 + $0x60] sm:$0xff]  ;;  %v3609_v46 = vld [vmem:[%s5925_s4 + $0x70] sm:$0xff] }
 0x6b5   : > { %v3839_v61 = vpop.f32.mrb[4].mxu1 }
 0x6b6   : > { %v1268_v62 = vpop.f32.mrb[5].mxu1 }
 0x6b7   : > { %3844 = vmatprep.mubr.msk.f32.mxu1 %vm882_vm1, %v1268_v62 }
 0x6b8   : > { %3845 = vmatmul.mubr.msk.f32.vlgmr.msra.gmra.mrb[6].mxu1 %vm882_vm1, %v3839_v61 }
 0x6b9   : > { %4076 = vmatpush3.bf16.msra.mxu1 %v4073_v56  ;;  %3851 = vmatprep.mubr.msk.f32.mxu1 %vm882_vm1, %v1068_v60  ;;  %v1876_v56 = vld [vmem:[%s5930_s20 + $0x48] sm:$0xff] }
 0x6ba   : > { %4084 = vmatprep.subr.bf16.mxu1 %v5420_v2  ;;  %v4119_v57 = vpack.c.bf16 %v1876_v56, %v1875_v55  ;;  %v3611_v55 = vld [vmem:[%s5925_s4 + $0x80] sm:$0xff]  ;;  %v3613_v56 = vld [vmem:[%s5925_s4 + $0x90] sm:$0xff] }
 0x6c0   : > { %3852 = vmatmul.mubr.msk.f32.vlgmr.msra.gmra.mrb[6].mxu1 %vm882_vm1, %v3825_v58 }
 0x6c1   : > { %4086 = vmatpush3.bf16.msra.mxu1 %v5420_v2  ;;  %3865 = vmatprep.mubr.msk.f32.mxu1 %vm882_vm1, %v1550_v6 }
 0x6c2   : > { %4088 = vmatprep.subr.bf16.mxu1 %v4087_v4 }
 0x6c4   : > { %3866 = vmatmul.mubr.msk.f32.vlgmr.msra.gmra.mrb[8].mxu1 %vm882_vm1, %v1551_v7  ;;  %v3598_v7 = vld [vmem:[#allocation13] ss:$0 sm:$0xff] }
 0x6c5   : > { %4090 = vmatpush3.bf16.msra.mxu1 %v4087_v4 }
 0x6c6   : > { %4104 = vmatprep.subr.bf16.mxu1 %v4103_v41 }
 0x797   : > { %v3867_v8 = vpop.f32.mrb[8].mxu1 }
 0x798   : > { %v1624_v9 = vpop.f32.mrb[9].mxu1 }
 0x799   : > { %3872 = vmatprep.mubr.msk.f32.mxu1 %vm882_vm1, %v1624_v9 }
 0x79a   : > { %3873 = vmatmul.mubr.msk.f32.vlgmr.msra.gmra.mrb[6].mxu1 %vm882_vm1, %v3867_v8 }
 0x79b   : > { %4106 = vmatpush3.bf16.msra.mxu1 %v4103_v41  ;;  %v3608_v41 = vld [vmem:[%s5925_s4 + $0x68] sm:$0xff] }
 0x79c   : > { %4108 = vmatprep.subr.bf16.mxu1 %v4107_v43 }
 0x79f   : > { %4110 = vmatpush3.bf16.msra.mxu1 %v4107_v43  ;;  %v4127_v43 = vpack.c.bf16 %v3610_v42, %v3608_v41 }
 0x7a0   : > { %4112 = vmatprep.subr.bf16.mxu1 %v4111_v47 }
 0x7a3   : > { %4114 = vmatpush3.bf16.msra.mxu1 %v4111_v47  ;;  %v4129_v47 = vpack.c.bf16 %v3609_v46, %v3607_v44 }
 0x7a4   : > { %4116 = vmatprep.subr.bf16.mxu1 %v4115_v53 }
 0x7a7   : > { %4118 = vmatpush3.bf16.msra.mxu1 %v4115_v53  ;;  %v4131_v53 = vpack.c.bf16 %v3614_v52, %v3612_v49 }
 0x7a8   : > { %4120 = vmatprep.subr.bf16.mxu1 %v4119_v57 }
 0x7ab   : > { %4122 = vmatpush3.bf16.msra.mxu1 %v4119_v57  ;;  %v4133_v57 = vpack.c.bf16 %v3613_v56, %v3611_v55 }
 0x86d   : > { %v3874_v12 = vpop.f32.mrb[6].mxu1 }
 0x86e   : > { %v1724_v13 = vadd.f32 %v3874_v12, %v3596_v11  ;;  %v1705_v14 = vpop.f32.mrb[7].mxu1 }
 0x86f   : > { %v1723_v15 = vadd.f32 %v3596_v11, %v1705_v14  ;;  %v1878_v14 = vld [vmem:[%s5930_s20 + $0x58] sm:$0xff] }
 0x870   : > { %v1726_v2 = vadd.f32 %v1724_v13, %v5403_v48  ;;  %v1877_v13 = vld [vmem:[%s5930_s20 + $0x50] sm:$0xff] }
 0x871   : > { %v1725_v16 = vadd.f32 %v1723_v15, %v5398_v45  ;;  %v1771_v45 = vld [vmem:[#allocation14] sm:$0xff]  ;;  %v4123_v15 = vpack.c.bf16 %v1878_v14, %v1877_v13  ;;  %v3606_v14 = vld [vmem:[%s5932_s19] ss:$0 sm:$0xff] }
 0x872   : > { %v1732_v17 = vsel %vm698_vm0, %v1726_v2, 0.0  ;;  %v4091_v29 = vpack.c.bf16 %v1772_v28, %v1771_v45 }
 0x873   : > { %1733 = vadd.xlane.f32.xlu0 %v1732_v17  ;;  %v1729_v18 = vsel %vm698_vm0, %v1725_v16, 0.0  ;;  %4124 = vmatprep.subr.bf16.mxu1 %v4123_v15 }
 0x874   : > { %1730 = vadd.xlane.f32.xlu1 %v1729_v18  ;;  %4092 = vmatprep.subr.bf16.mxu0 %v4091_v29 }
 0x875   : > { %4094 = vmatpush3.bf16.msra.mxu0 %v4091_v29  ;;  %4126 = vmatpush3.bf16.msra.mxu1 %v4123_v15 }
 0x876   : > { %4096 = vmatprep.subr.bf16.mxu0 %v4095_v34 }
 0x879   : > { %4098 = vmatpush3.bf16.msra.mxu0 %v4095_v34 }
 0x87a   : > { %4100 = vmatprep.subr.bf16.mxu0 %v4099_v37 }
 0x87d   : > { %4102 = vmatpush3.bf16.msra.mxu0 %v4099_v37 }
 0x87e   : > { %4128 = vmatprep.subr.bf16.mxu0 %v4127_v43 }
 0x900   : > { %v1734_v1 = vpop.xlane.xlu0 %1733 }
 0x901   : > { %v1736_v19 = vmul.f32 0.020833334, %v1734_v1  ;;  %v1731_v20 = vpop.xlane.xlu1 %1730 }
 0x902   : > { %v1735_v21 = vmul.f32 0.020833334, %v1731_v20 }
 0x903   : > { %v1738_v22 = vsub.f32 %v1726_v2, %v1736_v19  ;;  %v3599_v2 = vld [vmem:[#allocation16] ss:$0 sm:$0xff] }
 0x904   : > { %v1737_v23 = vsub.f32 %v1725_v16, %v1735_v21  ;;  %v3602_v21 = vld [vmem:[#allocation17] ss:$0 sm:$0xff] }
 0x905   : > { %v1740_v24 = vmul.f32 %v1738_v22, %v1738_v22 }
 0x906   : > { %v1739_v25 = vmul.f32 %v1737_v23, %v1737_v23 }
 0x907   : > { %v1744_v26 = vsel %vm698_vm0, %v1740_v24, 0.0 }
 0x908   : > { %1745 = vadd.xlane.f32.xlu0 %v1744_v26  ;;  %v1741_v48 = vsel %vm698_vm0, %v1739_v25, 0.0 }
 0x909   : > { %1742 = vadd.xlane.f32.xlu1 %v1741_v48 }
 0x995   : > { %v1746_v58 = vpop.xlane.xlu0 %1745 }
 0x996   : > { %v1748_v59 = vmul.f32 0.020833334, %v1746_v58  ;;  %v1743_v60 = vpop.xlane.xlu1 %1742  ;;  %v3616_v58 = vld [vmem:[%s5925_s4 + $0xa8] sm:$0xff] }
 0x997   : > { %v1747_v61 = vmul.f32 0.020833334, %v1743_v60  ;;  %v3615_v60 = vld [vmem:[%s5925_s4 + $0xa0] sm:$0xff] }
 0x998   : > { %v1750_v62 = vadd.f32 1e-05, %v1748_v59  ;;  %v3618_v59 = vld [vmem:[%s5925_s4 + $0xb8] sm:$0xff] }
 0x999   : > { %v1749_v63 = vadd.f32 1e-05, %v1747_v61  ;;  %v4135_v61 = vpack.c.bf16 %v3618_v59, %v3616_v58 }
 0x99a   : > { %4469 = vrsqrt.f32 %v1750_v62  ;;  %v3617_v62 = vld [vmem:[%s5925_s4 + $0xb0] sm:$0xff] }
 0x99b   : > { %4471 = vrsqrt.f32 %v1749_v63  ;;  %v4137_v63 = vpack.c.bf16 %v3617_v62, %v3615_v60 }
 0x9a4   : > { %v4470_v0 = vpop.eup %4469 }
 0x9a5   : > { %v4472_v4 = vpop.eup %4471  ;;  %v1754_v5 = vmul.f32 %v4470_v0, %v1738_v22 }
 0x9a6   : > { %v1753_v6 = vmul.f32 %v4472_v4, %v1737_v23 }
 0x9a7   : > { %v1762_v8 = vmul.f32 %v3597_v3, %v1754_v5 }
 0x9a8   : > { %v1761_v9 = vmul.f32 %v3597_v3, %v1753_v6 }
 0x9a9   : > { %v1770_v12 = vadd.f32 %v3598_v7, %v1762_v8 }
 0x9aa   : > { %v1769_v11 = vadd.f32 %v3598_v7, %v1761_v9 }
 0x9ac   : > { %3887 = vmatprep.mubr.msk.f32.mxu0 %vm698_vm0, %v1769_v11 }
 0x9ad   : > { %3888 = vmatmul.mubr.msk.f32.vlgmr.msra.gmra.mrb[8].mxu0 %vm698_vm0, %v1770_v12 }
 0x9ae   : > { %2110 = vmatprep.mubr.f32.mxu0 %v4895_v27  ;;  %4130 = vmatpush1.bf16.msra.mxu0 %v4129_v47 }
 0x9af   : > { %4132 = vmatprep.subr.bf16.mxu0 %v4131_v53 }
 0x9b2   : > { %4134 = vmatpush1.bf16.msra.mxu0 %v4133_v57 }
 0x9b3   : > { %4136 = vmatprep.subr.bf16.mxu0 %v4135_v61 }
 0x9b6   : > { %4138 = vmatpush1.bf16.msra.mxu0 %v4137_v63 }
 0xa80   : > { %v3889_v16 = vpop.f32.mrb[8].mxu0 }
 0xa81   : > { %v1862_v17 = vadd.f32 %v3889_v16, %v3599_v2  ;;  %v1856_v18 = vpop.f32.mrb[9].mxu0 }
 0xa82   : > { %v1857_v1 = vadd.f32 %v3599_v2, %v1856_v18  ;;  %v2028_v18 = vld [vmem:[#allocation8 + $0x2] sm:$0x3] }
 0xa83   : > { %v1866_v20 = vmax.f32 %v1862_v17, 0.0 }
 0xa84   : > { %v1865_v19 = vmax.f32 %v1857_v1, 0.0  ;;  %v2033_v1 = vrot.slane %v2028_v18, %v5411_v51 }
 0xa86   : > { %3914 = vmatprep.mubr.msk.f32.mxu1 %vm1886_vm6, %v1865_v19 }
 0xa87   : > { %3915 = vmatmul.mubr.msk.f32.vlgmr.msra.gmra.mrb[10].mxu1 %vm1886_vm6, %v1866_v20 }
 0xb5a   : > { %v3916_v22 = vpop.f32.mrb[10].mxu1 }
 0xb5b   : > { %v1965_v23 = vadd.f32 %v3916_v22, %v3602_v21  ;;  %v1959_v24 = vpop.f32.mrb[11].mxu1  ;;  %v2037_v22 = vrot.slane %v2028_v18, %v781_v54 }
 0xb5c   : > { %v1960_v25 = vadd.f32 %v3602_v21, %v1959_v24 }
 0xb5d   : > { %v1969_v26 = vadd.f32 %v1965_v23, %v1770_v12 }
 0xb5e   : > { %v1968_v48 = vadd.f32 %v1960_v25, %v1769_v11  ;;  %v3605_v11 = vld [vmem:[%s5931_s30] ss:$0 sm:$0xff] }
 0xb5f   : > { %v1975_v45 = vsel %vm698_vm0, %v1969_v26, 0.0 }
 0xb60   : > { %1976 = vadd.xlane.f32.xlu0 %v1975_v45  ;;  %v1972_v28 = vsel %vm698_vm0, %v1968_v48, 0.0 }
 0xb61   : > { %1973 = vadd.xlane.f32.xlu1 %v1972_v28 }
 0xbed   : > { %v1977_v29 = vpop.xlane.xlu0 %1976 }
 0xbee   : > { %v1979_v32 = vmul.f32 0.020833334, %v1977_v29  ;;  %v1974_v33 = vpop.xlane.xlu1 %1973 }
 0xbef   : > { %v1978_v34 = vmul.f32 0.020833334, %v1974_v33 }
 0xbf0   : > { %v1981_v35 = vsub.f32 %v1969_v26, %v1979_v32 }
 0xbf1   : > { %v1980_v36 = vsub.f32 %v1968_v48, %v1978_v34 }
 0xbf2   : > { %v1983_v37 = vmul.f32 %v1981_v35, %v1981_v35 }
 0xbf3   : > { %v1982_v38 = vmul.f32 %v1980_v36, %v1980_v36 }
 0xbf4   : > { %v1987_v39 = vsel %vm698_vm0, %v1983_v37, 0.0 }
 0xbf5   : > { %1988 = vadd.xlane.f32.xlu0 %v1987_v39  ;;  %v1984_v40 = vsel %vm698_vm0, %v1982_v38, 0.0 }
 0xbf6   : > { %1985 = vadd.xlane.f32.xlu1 %v1984_v40 }
 0xc82   : > { %v1989_v0 = vpop.xlane.xlu0 %1988 }
 0xc83   : > { %v1991_v3 = vmul.f32 0.020833334, %v1989_v0  ;;  %v1986_v4 = vpop.xlane.xlu1 %1985 }
 0xc84   : > { %v1990_v5 = vmul.f32 0.020833334, %v1986_v4 }
 0xc85   : > { %v1993_v6 = vadd.f32 1e-05, %v1991_v3 }
 0xc86   : > { %v1992_v7 = vadd.f32 1e-05, %v1990_v5 }
 0xc87   : > { %4473 = vrsqrt.f32 %v1993_v6 }
 0xc88   : > { %4475 = vrsqrt.f32 %v1992_v7 }
 0xc91   : > { %v4474_v8 = vpop.eup %4473 }
 0xc92   : > { %v4476_v9 = vpop.eup %4475  ;;  %v1997_v13 = vmul.f32 %v4474_v8, %v1981_v35 }
 0xc93   : > { %v1996_v12 = vmul.f32 %v4476_v9, %v1980_v36 }
 0xc94   : > { %v2005_v16 = vmul.f32 %v3605_v11, %v1997_v13 }
 0xc95   : > { %v2004_v15 = vmul.f32 %v3605_v11, %v1996_v12 }
 0xc96   : > { %v5617_v17 = vadd.f32 %v3606_v14, %v2005_v16 }
 0xc97   : > { %v5612_v2 = vadd.f32 %v3606_v14, %v2004_v15 }
 0xc99   : > { %3619 = vmatmul.mubr.msk.f32.vlgmr.msra.gmra.mrb[10].mxu0 %vm698_vm0, %v5612_v2 }
 0xc9a   : > { %2116 = vmatprep.mubr.f32.mxu0 %v4895_v27 }
 0xc9d   : > { %3620 = vmatmul.mubr.msk.f32.gmra.mrb[12].mxu0 %vm698_vm0, %v5617_v17 }
 0xd6c   : > { %v2112_v19 = vpop.f32.mrb[10].mxu0 }
 0xd6d   : > { %v2113_v20 = vadd.f32 %v2112_v19, %v2033_v1  ;;  %v2114_v21 = vpop.f32.mrb[11].mxu0 }
 0xd6e   : > { %v2115_v27 = vadd.f32 %v2114_v21, %v2037_v22 }
 0xd6f   : > { %v2130_v23 = vmul.f32 0.25, %v2113_v20 }
 0xd70   : > { %v2118_v24 = vpop.f32.mrb[12].mxu0 }
 0xd71   : > { %v2119_v25 = vadd.f32 %v2118_v24, %v2033_v1  ;;  %v2120_v26 = vpop.f32.mrb[13].mxu0  ;;  %3921 = vmatprep.mubr.msk.f32.mxu0 %vm882_vm1, %v2130_v23 }
 0xd72   : > { %v2121_v48 = vadd.f32 %v2120_v26, %v2037_v22 }
 0xd73   : > { %v5625_v45 = vpack.i.bf16 %v2119_v25, %v2113_v20  ;;  %v2131_v50 = vmul.f32 0.25, %v2119_v25 }
 0xd74   : > { %v5627_v28 = vpack.c.bf16 %v2121_v48, %v2115_v27 }
 0xd75   : > { %4422 = vrot.lane.b32.xlu0 %v5625_v45, %s5933_s15  ;;  %4417 = vrot.lane.b32.xlu1 %v5625_v45, %s5934_s22  ;;  %s3367_s22 = scalar_lea.sflag [#allocation4], %s5324_s28 }
 0xd79   : > { %2694 = vrot.lane.b32.xlu0 %v2130_v23, %s5935_s21  ;;  %2332 = vrot.lane.b32.xlu1 %v2130_v23, %s5936_s12 }
 0xd7d   : > { %2334 = vrot.lane.b32.xlu1 %v2131_v50, %s5936_s12  ;;  %s5941_s12 = sshll.u32 %s5324_s28, 4 }
 0xd81   : > { %4427 = vrot.lane.b32.xlu1 %v5625_v45, %s5937_s3  ;;  %s693_s3 = scalar_lea.vmem [#allocation19], %s5941_s12 }
 0xd85   : > { %2696 = vrot.lane.b32.xlu1 %v2131_v50, %s5935_s21 }
 0xde7   : > { %v4423_v51 = vpop.permute.xlu0 %4422  ;;  %v4418_v54 = vpop.permute.xlu1 %4417 }
 0xde8   : > { %v4425_v29 = vunpack.i.h.bf16 %v4423_v51  ;;  %v4424_v32 = vunpack.i.l.bf16 %v4423_v51  ;;  %v4420_v33 = vunpack.i.h.bf16 %v4418_v54  ;;  %v4419_v34 = vunpack.i.l.bf16 %v4418_v54 }
 0xdea   : > { %v4139_v35 = vpack.c.bf16 %v4420_v33, %v4419_v34  ;;  %v4149_v37 = vpack.c.bf16 %v4425_v29, %v4424_v32 }
 0xdeb   : > { %v2333_v36 = vpop.permute.xlu1 %2332  ;;  %v2695_v43 = vpop.permute.xlu0 %2694 }
 0xdec   : > { %4141 = vmatprep.subr.msk.bf16.mxu0 %vm5434_vm2, %v4139_v35 }
 0xded   : > { %4144 = vmatpush3.bf16.xpose.msk.msra.mxu0 %vm5434_vm2, %v4139_v35 }
 0xdee   : > { %4151 = vmatprep.subr.msk.bf16.mxu0 %vm5434_vm2, %v4149_v37 }
 0xdef   : > { %v2335_v38 = vpop.permute.xlu1 %2334 }
 0xdf3   : > { %v4428_v39 = vpop.permute.xlu1 %4427 }
 0xdf4   : > { %v4430_v40 = vunpack.i.h.bf16 %v4428_v39  ;;  %v4429_v41 = vunpack.i.l.bf16 %v4428_v39  ;;  %3922 = vmatmul.mubr.msk.f32.vlgmr.msra.gmra.mrb[14].mxu0 %vm882_vm1, %v2131_v50 }
 0xdf5   : > { %4154 = vmatpush3.bf16.xpose.msk.msra.mxu0 %vm5434_vm2, %v4149_v37  ;;  %3935 = vmatprep.mubr.msk.f32.mxu0 %vm882_vm1, %v2333_v36 }
 0xdf6   : > { %v4167_v42 = vpack.c.bf16 %v4430_v40, %v4429_v41 }
 0xdf7   : > { %v2697_v44 = vpop.permute.xlu1 %2696 }
 0xdf8   : > { %4169 = vmatprep.subr.msk.bf16.mxu0 %vm5434_vm2, %v4167_v42 }
 0xdfc   : > { %3936 = vmatmul.mubr.msk.f32.vlgmr.msra.gmra.mrb[16].mxu0 %vm882_vm1, %v2335_v38 }
 0xdfd   : > { %4172 = vmatpush3.bf16.xpose.msk.msra.mxu0 %vm5434_vm2, %v4167_v42  ;;  %3963 = vmatprep.mubr.msk.f32.mxu0 %vm882_vm1, %v2695_v43 }
 0xe04   : > { %3964 = vmatmul.mubr.msk.f32.vlgmr.msra.gmra.mrb[18].mxu0 %vm882_vm1, %v2697_v44 }
 0xec7   : > { %v3923_v46 = vpop.f32.mrb[14].mxu0 }
 0xec8   : > { %v2220_v47 = vadd.f32 %v3923_v46, %v5461_v30  ;;  %v2214_v49 = vpop.f32.mrb[15].mxu0 }
 0xec9   : > { %v2215_v52 = vadd.f32 %v2214_v49, %v5463_v31 }
 0xeca   : > { %v2226_v53 = vsel %vm882_vm1, %v2220_v47, -inf }
 0xecb   : > { %2227 = vmax.xlane.f32.xlu1 %v2226_v53  ;;  %v2223_v55 = vsel %vm882_vm1, %v2215_v52, -inf }
 0xecc   : > { %2224 = vmax.xlane.f32.xlu0 %v2223_v55 }
 0xecf   : > { %v3937_v56 = vpop.f32.mrb[16].mxu0 }
 0xed0   : > { %v2414_v10 = vpop.f32.mrb[17].mxu0  ;;  %v2420_v58 = vadd.f32 %v3937_v56, %v5461_v30 }
 0xed1   : > { %v2415_v57 = vadd.f32 %v2414_v10, %v5463_v31  ;;  %v3623_v10 = vld [vmem:[%s5929_s6 + $0x40] sm:$0xff] }
 0xed2   : > { %v2426_v61 = vsel %vm882_vm1, %v2420_v58, -inf }
 0xed3   : > { %v2423_v59 = vsel %vm882_vm1, %v2415_v57, -inf }
 0xed4   : > { %2424 = vmax.xlane.f32.xlu0 %v2423_v59  ;;  %v3621_v59 = vld [vmem:[%s5929_s6 + $0x30] sm:$0xff] }
 0xed7   : > { %v3965_v60 = vpop.f32.mrb[18].mxu0 }
 0xed8   : > { %v2776_v62 = vpop.f32.mrb[19].mxu0  ;;  %2427 = vmax.xlane.f32.xlu0 %v2426_v61  ;;  %v2782_v22 = vadd.f32 %v3965_v60, %v5461_v30  ;;  %v3622_v60 = vld [vmem:[%s5929_s6 + $0x38] sm:$0xff] }
 0xed9   : > { %v2777_v23 = vadd.f32 %v2776_v62, %v5463_v31  ;;  %v4163_v61 = vpack.c.bf16 %v3622_v60, %v3621_v59 }
 0xeda   : > { %v2788_v24 = vsel %vm882_vm1, %v2782_v22, -inf }
 0xedb   : > { %v2785_v25 = vsel %vm882_vm1, %v2777_v23, -inf }
 0xf58   : > { %v2228_v63 = vpop.xlane.xlu1 %2227 }
 0xf59   : > { %v2230_v0 = vsub.f32 %v2220_v47, %v2228_v63  ;;  %v2225_v3 = vpop.xlane.xlu0 %2224 }
 0xf5a   : > { %v2229_v4 = vsub.f32 %v2215_v52, %v2225_v3 }
 0xf5b   : > { %v2233_v5 = vmul.f32 1.442695, %v2230_v0 }
 0xf5c   : > { %v2231_v6 = vmul.f32 1.442695, %v2229_v4 }
 0xf5d   : > { %4477 = vpow2.f32 %v2233_v5 }
 0xf5e   : > { %4479 = vpow2.f32 %v2231_v6  ;;  %v3625_v6 = vld [vmem:[%s5929_s6 + $0x50] sm:$0xff] }
 0xf61   : > { %v2425_v7 = vpop.xlane.xlu0 %2424 }
 0xf62   : > { %v2429_v8 = vsub.f32 %v2415_v57, %v2425_v7  ;;  %v3624_v57 = vld [vmem:[%s5929_s6 + $0x48] sm:$0xff]  ;;  %v3626_v7 = vld [vmem:[%s5929_s6 + $0x58] sm:$0xff] }
 0xf64   : > { %v2431_v9 = vmul.f32 1.442695, %v2429_v8 }
 0xf65   : > { %v2428_v11 = vpop.xlane.xlu0 %2427 }
 0xf66   : > { %4481 = vpow2.f32 %v2431_v9  ;;  %v2430_v12 = vsub.f32 %v2420_v58, %v2428_v11  ;;  %v4159_v58 = vpack.c.bf16 %v3624_v57, %v3623_v10  ;;  %v4177_v9 = vpack.c.bf16 %v3626_v7, %v3625_v6 }
 0xf67   : > { %v4478_v13 = vpop.eup %4477 }
 0xf68   : > { %v4480_v14 = vpop.eup %4479  ;;  %v2433_v15 = vmul.f32 1.442695, %v2430_v12  ;;  %v2238_v16 = vsel %vm882_vm1, %v4478_v13, 0.0 }
 0xf69   : > { %2239 = vadd.xlane.f32.xlu1 %v2238_v16  ;;  %v2235_v18 = vsel %vm882_vm1, %v4480_v14, 0.0  ;;  %v3651_v16 = vld [vmem:[#allocation10 + $0x1] ss:$0 sm:$0xff] }
 0xf6a   : > { %4483 = vpow2.f32 %v2433_v15  ;;  %2236 = vadd.xlane.f32.xlu0 %v2235_v18 }
 0xf70   : > { %v4482_v1 = vpop.eup %4481 }
 0xf71   : > { %v2435_v19 = vsel %vm882_vm1, %v4482_v1, 0.0 }
 0xf72   : > { %2436 = vadd.xlane.f32.xlu0 %v2435_v19 }
 0xf74   : > { %v4484_v20 = vpop.eup %4483 }
 0xf75   : > { %v2438_v21 = vsel %vm882_vm1, %v4484_v20, 0.0 }
 0xf76   : > { %2439 = vadd.xlane.f32.xlu1 %v2438_v21 }
 0xf87   : > { %4437 = vrot.lane.b32.xlu1 %v5625_v45, %s5938_s1  ;;  %s3380_s1 = sshll.u32 %s693_s3, 4  ;;  %s5789_s1 = int_to_ptr.vmem [resolvable:$true] %s3380_s1 }
 0xf88   : > { %4432 = vrot.lane.b32.xlu0 %v5625_v45, %s5939_s16  ;;  %s3687_s16 = sshll.u32 %s5018_s0, 8  ;;  %s4791_s21 = scalar_lea.vmem %s5789_s1, 256 }
 0xf89   : > { %s5794_s4 = scalar_lea.hbm %s5942_s5, %s3687_s16  ;;  %p4792_p4 = scmp.ne.s32.totalorder %s5789_s1, %s4791_s21 }
 0xf8a   : > { %s4904_s0 = smov [#allocation19]  }
 0xf8b   : > { %p4793_p3 = pnand %p4792_p4, %p5943_p1  ;;  %s4795_s12 = sshll.u32 %s4904_s0, 4  ;;  %s4796_s12 = int_to_ptr.vmem [resolvable:$false] %s4795_s12 }
 0xf8c   : > { %p4798_p6 = scmp.lt.s32.totalorder %s5789_s1, %s4796_s12 }
 0xf8d   : > { %p4794_p8 = pneg %p4793_p3 }
 0xfa7   : > { %2789 = vmax.xlane.f32.xlu0 %v2788_v24 }
 0xfab   : > { %2786 = vmax.xlane.f32.xlu1 %v2785_v25 }
 0xff6   : > { %v2240_v27 = vpop.xlane.xlu1 %2239 }
 0xff7   : > { %v2237_v26 = vpop.xlane.xlu0 %2236 }
 0xff8   : > { %4485 = vrcp.f32 %v2237_v26 }
 0xff9   : > { %4487 = vrcp.f32 %v2240_v27 }
 0xfff   : > { %v2437_v48 = vpop.xlane.xlu0 %2436 }
0x1000   : > { %4489 = vrcp.f32 %v2437_v48 }
0x1002   : > { %v4486_v50 = vpop.eup %4485 }
0x1003   : > { %v2440_v51 = vpop.xlane.xlu1 %2439  ;;  %v4433_v54 = vpop.permute.xlu0 %4432  ;;  %v2243_v45 = vmul.f32 %v4486_v50, %v4480_v14 }
0x1004   : > { %4491 = vrcp.f32 %v2440_v51  ;;  %v4435_v30 = vunpack.i.h.bf16 %v4433_v54  ;;  %v4434_v29 = vunpack.i.l.bf16 %v4433_v54  ;;  %v4488_v32 = vpop.eup %4487 }
0x1005   : > { %3928 = vmatprep.mubr.msk.f32.mxu1 %vm882_vm1, %v2243_v45  ;;  %v2244_v37 = vmul.f32 %v4488_v32, %v4478_v13  ;;  %v3033_v32 = vld [vmem:[#allocation14 + $0x48] sm:$0xff] }
0x1006   : > { %v4145_v31 = vpack.c.bf16 %v4435_v30, %v4434_v29  ;;  %v3031_v30 = vld [vmem:[#allocation14 + $0x38] sm:$0xff] }
0x1007   : > { %v4438_v33 = vpop.permute.xlu1 %4437 }
0x1008   : > { %v4440_v34 = vunpack.i.h.bf16 %v4438_v33  ;;  %v4439_v35 = vunpack.i.l.bf16 %v4438_v33  ;;  %4146 = vmatprep.subr.bf16.mxu1 %v4145_v31 }
0x1009   : > { %4148 = vmatpush3.bf16.msra.mxu1 %v4145_v31  ;;  %v3032_v31 = vld [vmem:[#allocation14 + $0x40] sm:$0xff] }
0x100a   : > { %v4490_v36 = vpop.eup %4489  ;;  %v4155_v38 = vpack.c.bf16 %v4440_v34, %v4439_v35  ;;  %v4185_v33 = vpack.c.bf16 %v3033_v32, %v3032_v31  ;;  %v3034_v34 = vld [vmem:[#allocation14 + $0x50] sm:$0xff]  ;;  %v3035_v35 = vld [vmem:[#allocation14 + $0x58] sm:$0xff] }
0x100b   : > { %v2443_v39 = vmul.f32 %v4490_v36, %v4482_v1  ;;  %v4189_v36 = vpack.c.bf16 %v3035_v35, %v3034_v34  ;;  %v3278_v34 = vld [vmem:[%s5940_s2 + $0x8] sm:$0xff] }
0x100c   : > { %3929 = vmatmul.mubr.msk.f32.vlgmr.msra.gmra.mrb[12].mxu1 %vm882_vm1, %v2244_v37  ;;  %4156 = vmatprep.subr.bf16.mxu1 %v4155_v38  ;;  %v3657_v37 = vld [vmem:[%s5930_s20 + $0x60] sm:$0xff] }
0x100d   : > { %4158 = vmatpush3.bf16.msra.mxu1 %v4155_v38  ;;  %3942 = vmatprep.mubr.msk.f32.mxu1 %vm882_vm1, %v2443_v39  ;;  %v3658_v38 = vld [vmem:[%s5930_s20 + $0x68] sm:$0xff]  ;;  %v3659_v39 = vld [vmem:[%s5930_s20 + $0x70] sm:$0xff] }
0x100e   : > { %v4492_v40 = vpop.eup %4491  ;;  %4160 = vmatprep.subr.bf16.mxu1 %v4159_v58 }
0x100f   : > { %v2444_v41 = vmul.f32 %v4492_v40, %v4484_v20  ;;  %v4193_v40 = vpack.c.bf16 %v3658_v38, %v3657_v37  ;;  %v3280_v37 = vld [vmem:[%s5940_s2 + $0x18] sm:$0xff] }
0x1011   : > { %3943 = vmatmul.mubr.msk.f32.vlgmr.msra.gmra.mrb[14].mxu1 %vm882_vm1, %v2444_v41  ;;  %v3660_v41 = vld [vmem:[%s5930_s20 + $0x78] sm:$0xff] }
0x1012   : > { %4162 = vmatpush3.bf16.msra.mxu1 %v4159_v58 }
0x1013   : > { %4164 = vmatprep.subr.bf16.mxu1 %v4163_v61 }
0x1034   : > { %v2790_v42 = vpop.xlane.xlu0 %2789 }
0x1035   : > { %v2792_v43 = vsub.f32 %v2782_v22, %v2790_v42  ;;  %v4197_v42 = vpack.c.bf16 %v3660_v41, %v3659_v39  ;;  %v3281_v39 = vld [vmem:[%s5940_s2 + $0x20] sm:$0xff] }
0x1037   : > { %v2795_v44 = vmul.f32 1.442695, %v2792_v43  ;;  %v3661_v43 = vld [vmem:[%s5930_s20 + $0x80] sm:$0xff] }
0x1038   : > { %v2787_v46 = vpop.xlane.xlu1 %2786 }
0x1039   : > { %4493 = vpow2.f32 %v2795_v44  ;;  %v2791_v47 = vsub.f32 %v2777_v23, %v2787_v46  ;;  %v3662_v44 = vld [vmem:[%s5930_s20 + $0x88] sm:$0xff] }
0x103a   : > { %v4201_v46 = vpack.c.bf16 %v3662_v44, %v3661_v43 }
0x103b   : > { %v2793_v49 = vmul.f32 1.442695, %v2791_v47  ;;  %v3663_v47 = vld [vmem:[%s5930_s20 + $0x90] sm:$0xff] }
0x103d   : > { %4495 = vpow2.f32 %v2793_v49  ;;  %v3664_v49 = vld [vmem:[%s5930_s20 + $0x98] sm:$0xff] }
0x1043   : > { %v4494_v52 = vpop.eup %4493 }
0x1044   : > { %v2800_v53 = vsel %vm882_vm1, %v4494_v52, 0.0 }
0x1045   : > { %2801 = vadd.xlane.f32.xlu1 %v2800_v53  ;;  %v3665_v53 = vld [vmem:[%s5930_s20 + $0xa0] sm:$0xff] }
0x1047   : > { %v4496_v55 = vpop.eup %4495 }
0x1048   : > { %v2797_v56 = vsel %vm882_vm1, %v4496_v55, 0.0 }
0x1049   : > { %2798 = vadd.xlane.f32.xlu0 %v2797_v56 }
0x10d2   : > { %v2802_v3 = vpop.xlane.xlu1 %2801 }
0x10d6   : > { %v2799_v62 = vpop.xlane.xlu0 %2798 }
0x10d7   : > { %4497 = vrcp.f32 %v2799_v62 }
0x10d8   : > { %4499 = vrcp.f32 %v2802_v3 }
0x10df   : > { %v3930_v63 = vpop.f32.mrb[12].mxu1 }
0x10e0   : > { %v2323_v0 = vpop.f32.mrb[13].mxu1 }
0x10e1   : > { %v4498_v8 = vpop.eup %4497 }
0x10e2   : > { %v4500_v11 = vpop.eup %4499  ;;  %v2805_v12 = vmul.f32 %v4498_v8, %v4496_v55  ;;  %v3666_v55 = vld [vmem:[%s5930_s20 + $0xa8] sm:$0xff] }
0x10e3   : > { %v2806_v13 = vmul.f32 %v4500_v11, %v4494_v52  ;;  %v4205_v52 = vpack.c.bf16 %v3664_v49, %v3663_v47  ;;  %v4209_v56 = vpack.c.bf16 %v3666_v55, %v3665_v53  ;;  %v3667_v11 = vld [vmem:[%s5930_s20 + $0xb0] sm:$0xff]  ;;  %v3674_v53 = vld [vmem:[%s5931_s30 + $0x1] ss:$0 sm:$0xff] }
0x10e4   : > { %v3944_v4 = vpop.f32.mrb[14].mxu1 }
0x10e5   : > { %v2523_v5 = vpop.f32.mrb[15].mxu1 }
0x10e6   : > { %3949 = vmatprep.mubr.msk.f32.mxu1 %vm882_vm1, %v2523_v5  ;;  %v3653_v5 = vld [vmem:[#allocation13 + $0x1] ss:$0 sm:$0xff] }
0x10e7   : > { %3950 = vmatmul.mubr.msk.f32.vlgmr.msra.gmra.mrb[16].mxu1 %vm882_vm1, %v3944_v4 }
0x10e8   : > { %4166 = vmatpush3.bf16.msra.mxu1 %v4163_v61  ;;  %3956 = vmatprep.mubr.msk.f32.mxu1 %vm882_vm1, %v2323_v0 }
0x10e9   : > { %4174 = vmatprep.subr.bf16.mxu1 %v5627_v28 }
0x10ef   : > { %3957 = vmatmul.mubr.msk.f32.vlgmr.msra.gmra.mrb[16].mxu1 %vm882_vm1, %v3930_v63  ;;  %v3652_v63 = vld [vmem:[#allocation11 + $0x1] ss:$0 sm:$0xff] }
0x10f0   : > { %4176 = vmatpush3.bf16.msra.mxu1 %v5627_v28  ;;  %3970 = vmatprep.mubr.msk.f32.mxu1 %vm882_vm1, %v2805_v12  ;;  %v3668_v12 = vld [vmem:[%s5930_s20 + $0xb8] sm:$0xff] }
0x10f1   : > { %4178 = vmatprep.subr.bf16.mxu1 %v4177_v9 }
0x10f3   : > { %3971 = vmatmul.mubr.msk.f32.vlgmr.msra.gmra.mrb[18].mxu1 %vm882_vm1, %v2806_v13  ;;  %v4213_v13 = vpack.c.bf16 %v3668_v12, %v3667_v11 }
0x10f4   : > { %4180 = vmatpush3.bf16.msra.mxu1 %v4177_v9 }
0x10f5   : > { %4194 = vmatprep.subr.bf16.mxu1 %v4193_v40 }
0x11c6   : > { %v3972_v14 = vpop.f32.mrb[18].mxu1 }
0x11c7   : > { %v2879_v15 = vpop.f32.mrb[19].mxu1 }
0x11c8   : > { %3977 = vmatprep.mubr.msk.f32.mxu1 %vm882_vm1, %v2879_v15 }
0x11c9   : > { %3978 = vmatmul.mubr.msk.f32.vlgmr.msra.gmra.mrb[16].mxu1 %vm882_vm1, %v3972_v14  ;;  %v3654_v14 = vld [vmem:[#allocation16 + $0x1] ss:$0 sm:$0xff] }
0x11ca   : > { %4196 = vmatpush3.bf16.msra.mxu1 %v4193_v40  ;;  %v3282_v40 = vld [vmem:[%s5940_s2 + $0x28] sm:$0xff] }
0x11cb   : > { %4198 = vmatprep.subr.bf16.mxu1 %v4197_v42  ;;  %v4225_v41 = vpack.c.bf16 %v3282_v40, %v3281_v39 }
0x11ce   : > { %4200 = vmatpush3.bf16.msra.mxu1 %v4197_v42 }
0x11cf   : > { %4202 = vmatprep.subr.bf16.mxu1 %v4201_v46 }
0x11d2   : > { %4204 = vmatpush3.bf16.msra.mxu1 %v4201_v46 }
0x11d3   : > { %4206 = vmatprep.subr.bf16.mxu1 %v4205_v52 }
0x11d6   : > { %4208 = vmatpush3.bf16.msra.mxu1 %v4205_v52 }
0x11d7   : > { %4210 = vmatprep.subr.bf16.mxu1 %v4209_v56 }
0x11da   : > { %4212 = vmatpush3.bf16.msra.mxu1 %v4209_v56 }
0x11db   : > { %4214 = vmatprep.subr.bf16.mxu1 %v4213_v13 }
0x11de   : > { %4216 = vmatpush3.bf16.msra.mxu1 %v4213_v13 }
0x129c   : > { %v3979_v18 = vpop.f32.mrb[16].mxu1 }
0x129d   : > { %v2980_v1 = vadd.f32 %v3979_v18, %v3651_v16  ;;  %v2960_v19 = vpop.f32.mrb[17].mxu1 }
0x129e   : > { %v2979_v20 = vadd.f32 %v3651_v16, %v2960_v19 }
0x129f   : > { %v2982_v28 = vadd.f32 %v2980_v1, %v5617_v17 }
0x12a0   : > { %v2981_v21 = vadd.f32 %v2979_v20, %v5612_v2  ;;  %v3030_v2 = vld [vmem:[#allocation14 + $0x30] sm:$0xff] }
0x12a1   : > { %v2990_v22 = vsel %vm698_vm0, %v2982_v28, 0.0  ;;  %v4181_v29 = vpack.c.bf16 %v3031_v30, %v3030_v2 }
0x12a2   : > { %2991 = vadd.xlane.f32.xlu1 %v2990_v22  ;;  %v2987_v23 = vsel %vm698_vm0, %v2981_v21, 0.0 }
0x12a3   : > { %2988 = vadd.xlane.f32.xlu0 %v2987_v23  ;;  %4182 = vmatprep.subr.bf16.mxu0 %v4181_v29 }
0x12a4   : > { %4184 = vmatpush3.bf16.msra.mxu0 %v4181_v29 }
0x12a5   : > { %4186 = vmatprep.subr.bf16.mxu0 %v4185_v33 }
0x12a8   : > { %4188 = vmatpush3.bf16.msra.mxu0 %v4185_v33  ;;  %v3277_v33 = vld [vmem:[%s5940_s2] sm:$0xff] }
0x12a9   : > { %4190 = vmatprep.subr.bf16.mxu0 %v4189_v36  ;;  %v4217_v35 = vpack.c.bf16 %v3278_v34, %v3277_v33 }
0x12ac   : > { %4192 = vmatpush3.bf16.msra.mxu0 %v4189_v36  ;;  %v3279_v36 = vld [vmem:[%s5940_s2 + $0x10] sm:$0xff]  ;;  %s4797_s2 = scalar_lea.vmem %s4796_s12, 512 }
0x12ad   : > { %4218 = vmatprep.subr.bf16.mxu0 %v4217_v35  ;;  %v4221_v38 = vpack.c.bf16 %v3280_v37, %v3279_v36  ;;  %p4799_p0 = scmp.lt.s32.totalorder %s4797_s2, %s4791_s21 }
0x12af   : > { %p4800_p2 = por %p4799_p0, %p4798_p6 }
0x12b1   : > { %p4801_p9 = pnand %p4800_p2, %p4794_p8 }
0x132f   : > { %v2992_v24 = vpop.xlane.xlu1 %2991 }
0x1330   : > { %v2994_v25 = vmul.f32 0.020833334, %v2992_v24  ;;  %v2989_v26 = vpop.xlane.xlu0 %2988 }
0x1331   : > { %v2993_v27 = vmul.f32 0.020833334, %v2989_v26 }
0x1332   : > { %v2996_v48 = vsub.f32 %v2982_v28, %v2994_v25  ;;  %v3669_v28 = vld [vmem:[#allocation17 + $0x1] ss:$0 sm:$0xff] }
0x1333   : > { %v2995_v50 = vsub.f32 %v2981_v21, %v2993_v27 }
0x1334   : > { %v2998_v51 = vmul.f32 %v2996_v48, %v2996_v48 }
0x1335   : > { %v2997_v54 = vmul.f32 %v2995_v50, %v2995_v50 }
0x1336   : > { %v3002_v45 = vsel %vm698_vm0, %v2998_v51, 0.0 }
0x1337   : > { %3003 = vadd.xlane.f32.xlu1 %v3002_v45  ;;  %v2999_v17 = vsel %vm698_vm0, %v2997_v54, 0.0 }
0x1338   : > { %3000 = vadd.xlane.f32.xlu0 %v2999_v17 }
0x13c4   : > { %v3004_v10 = vpop.xlane.xlu1 %3003 }
0x13c5   : > { %v3006_v57 = vmul.f32 0.020833334, %v3004_v10  ;;  %v3001_v58 = vpop.xlane.xlu0 %3000 }
0x13c6   : > { %v3005_v59 = vmul.f32 0.020833334, %v3001_v58 }
0x13c7   : > { %v3008_v60 = vadd.f32 1e-05, %v3006_v57  ;;  %v3675_v57 = vld [vmem:[%s5932_s19 + $0x1] ss:$0 sm:$0xff] }
0x13c8   : > { %v3007_v61 = vadd.f32 1e-05, %v3005_v59 }
0x13c9   : > { %4501 = vrsqrt.f32 %v3008_v60 }
0x13ca   : > { %4503 = vrsqrt.f32 %v3007_v61 }
0x13d3   : > { %v4502_v62 = vpop.eup %4501 }
0x13d4   : > { %v4504_v0 = vpop.eup %4503  ;;  %v3012_v3 = vmul.f32 %v4502_v62, %v2996_v48 }
0x13d5   : > { %v3011_v4 = vmul.f32 %v4504_v0, %v2995_v50 }
0x13d6   : > { %v3020_v6 = vmul.f32 %v3652_v63, %v3012_v3 }
0x13d7   : > { %v3019_v7 = vmul.f32 %v3652_v63, %v3011_v4 }
0x13d8   : > { %v3028_v9 = vadd.f32 %v3653_v5, %v3020_v6 }
0x13d9   : > { %v3027_v8 = vadd.f32 %v3653_v5, %v3019_v7 }
0x13db   : > { %3992 = vmatprep.mubr.msk.f32.mxu0 %vm698_vm0, %v3027_v8 }
0x13dc   : > { %3993 = vmatmul.mubr.msk.f32.vlgmr.msra.gmra.mrb[20].mxu0 %vm698_vm0, %v3028_v9 }
0x13dd   : > { %4220 = vmatpush3.bf16.msra.mxu0 %v4217_v35 }
0x13de   : > { %4222 = vmatprep.subr.bf16.mxu0 %v4221_v38 }
0x13e1   : > { %4224 = vmatpush3.bf16.msra.mxu0 %v4221_v38 }
0x13e2   : > { %4226 = vmatprep.subr.bf16.mxu0 %v4225_v41 }
0x13e5   : > { %4228 = vmatpush3.bf16.msra.mxu0 %v4225_v41 }
0x14af   : > { %v3994_v15 = vpop.f32.mrb[20].mxu0 }
0x14b0   : > { %v3122_v16 = vadd.f32 %v3994_v15, %v3654_v14  ;;  %v3116_v18 = vpop.f32.mrb[21].mxu0 }
0x14b1   : > { %v3117_v1 = vadd.f32 %v3654_v14, %v3116_v18 }
0x14b2   : > { %v3126_v20 = vmax.f32 %v3122_v16, 0.0 }
0x14b3   : > { %v3125_v19 = vmax.f32 %v3117_v1, 0.0 }
0x14b5   : > { %4019 = vmatprep.mubr.msk.f32.mxu1 %vm1886_vm6, %v3125_v19 }
0x14b6   : > { %4020 = vmatmul.mubr.msk.f32.vlgmr.msra.gmra.mrb[20].mxu1 %vm1886_vm6, %v3126_v20 }
0x1589   : > { %v4021_v21 = vpop.f32.mrb[20].mxu1 }
0x158a   : > { %v3226_v22 = vadd.f32 %v4021_v21, %v3669_v28  ;;  %v3220_v23 = vpop.f32.mrb[21].mxu1 }
0x158b   : > { %v3221_v24 = vadd.f32 %v3669_v28, %v3220_v23 }
0x158c   : > { %v3230_v25 = vadd.f32 %v3226_v22, %v3028_v9 }
0x158d   : > { %v3229_v26 = vadd.f32 %v3221_v24, %v3027_v8 }
0x158e   : > { %v3238_v27 = vsel %vm698_vm0, %v3230_v25, 0.0 }
0x158f   : > { %3239 = vadd.xlane.f32.xlu1 %v3238_v27  ;;  %v3235_v48 = vsel %vm698_vm0, %v3229_v26, 0.0 }
0x1590   : > { %3236 = vadd.xlane.f32.xlu0 %v3235_v48 }
0x161c   : > { %v3240_v50 = vpop.xlane.xlu1 %3239 }
0x161d   : > { %v3242_v51 = vmul.f32 0.020833334, %v3240_v50  ;;  %v3237_v54 = vpop.xlane.xlu0 %3236 }
0x161e   : > { %v3241_v45 = vmul.f32 0.020833334, %v3237_v54 }
0x161f   : > { %v3244_v17 = vsub.f32 %v3230_v25, %v3242_v51 }
0x1620   : > { %v3243_v2 = vsub.f32 %v3229_v26, %v3241_v45 }
0x1621   : > { %v3246_v30 = vmul.f32 %v3244_v17, %v3244_v17 }
0x1622   : > { %v3245_v29 = vmul.f32 %v3243_v2, %v3243_v2 }
0x1623   : > { %v3250_v31 = vsel %vm698_vm0, %v3246_v30, 0.0 }
0x1624   : > { %3251 = vadd.xlane.f32.xlu1 %v3250_v31  ;;  %v3247_v32 = vsel %vm698_vm0, %v3245_v29, 0.0 }
0x1625   : > { %3248 = vadd.xlane.f32.xlu0 %v3247_v32 }
0x16b1   : > { %v3252_v42 = vpop.xlane.xlu1 %3251 }
0x16b2   : > { %v3254_v43 = vmul.f32 0.020833334, %v3252_v42  ;;  %v3249_v44 = vpop.xlane.xlu0 %3248 }
0x16b3   : > { %v3253_v46 = vmul.f32 0.020833334, %v3249_v44 }
0x16b4   : > { %v3256_v47 = vadd.f32 1e-05, %v3254_v43 }
0x16b5   : > { %v3255_v49 = vadd.f32 1e-05, %v3253_v46 }
0x16b6   : > { %4505 = vrsqrt.f32 %v3256_v47 }
0x16b7   : > { %4507 = vrsqrt.f32 %v3255_v49 }
0x16c0   : > { %v4506_v52 = vpop.eup %4505 }
0x16c1   : > { %v4508_v55 = vpop.eup %4507  ;;  %v3260_v56 = vmul.f32 %v4506_v52, %v3244_v17 }
0x16c2   : > { %v3259_v10 = vmul.f32 %v4508_v55, %v3243_v2 }
0x16c3   : > { %v3268_v58 = vmul.f32 %v3674_v53, %v3260_v56 }
0x16c4   : > { %v3267_v59 = vmul.f32 %v3674_v53, %v3259_v10 }
0x16c5   : > { %v3276_v61 = vadd.f32 %v3675_v57, %v3268_v58 }
0x16c6   : > { %v3275_v60 = vadd.f32 %v3675_v57, %v3267_v59 }
0x16c8   : > { %4034 = vmatprep.mubr.msk.f32.mxu0 %vm698_vm0, %v3275_v60 }
0x16c9   : > { %4035 = vmatmul.mubr.msk.f32.vlgmr.msra.gmra.mrb[22].mxu0 %vm698_vm0, %v3276_v61 }
0x179c   : > { %v4036_v62 = vpop.f32.mrb[22].mxu0 }
0x179d   : > { %3365 = vst [vmem:[%s693_s3 + $0x8] sm:$0xff] %v4036_v62  ;;  %v3355_v63 = vpop.f32.mrb[23].mxu0 }
0x179e   : > { %3364 = vst [vmem:[%s693_s3] sm:$0xff] %v3355_v63 }
0x179f   : > { %4804 = shalt.err (!%p4801_p9)
}
0x17a0   : > { %s4805_s3 = scalar_lea.hbm %s5794_s4, 256  ;;  %s4809_s15 = scalar_lea.hbm %s5942_s5, 512 }
0x17a1   : > { %p4806_p10 = scmp.ne.s32.totalorder %s5794_s4, %s4805_s3  ;;  %p4810_p13 = scmp.lt.u32.totalorder %s5794_s4, %s5942_s5 }
0x17a2   : > { %p4811_p5 = scmp.lt.u32.totalorder %s4809_s15, %s4805_s3  ;;  %p4813_p4 = scmp.lt.u32.totalorder %s4805_s3, %s5794_s4 }
0x17a3   : > { %p4807_p12 = pnand %p4806_p10, %p5943_p1 }
0x17a4   : > { %p4812_p7 = por %p4811_p5, %p4810_p13 }
0x17a5   : > { %p4808_p11 = pneg %p4807_p12 }
0x17a6   : > { %p4814_p3 = por %p4813_p4, %p4812_p7 }
0x17a8   : > { %p4815_p8 = pnand %p4814_p3, %p4808_p11 }
0x17aa   : > { %4818 = shalt.err (!%p4815_p8)
}
0x17ab   : > { %s4905_s2 = smov 128   ;;  %s4906_s21 = smov 8  }
0x17ac   : > { %4275 = dma.vmem_to_hbm [thread:$0]  (%p5943_p1), %s5789_s1, 256, %s5794_s4, %s3367_s22, %s4905_s2, %s4905_s2, %s4906_s21  }
0x17ad PF: > { %s3395_s16 = sand.u32 1, %s4865_s24   ;;  %p5944_p6 = scmp.ne.s32.totalorder %s5909_s29, 0 }
0x17ae   : > { %p5945_p0 = scmp.ge.s32.totalorder %s4877_s27, 2  ;;  %s3396_s3 = scalar_lea.sflag [#allocation4], %s3395_s16 }
0x17b0   : > { %p4310_p2 = pnand %p5945_p0, %p5944_p6 }
0x17b2   : > { %4860 = dma.done.wait (!%p4310_p2), %s3396_s3, 256  }
0x17b3   : > { %4862 = vsyncadd (!%p4310_p2), %s3396_s3, 4294967040  ;;  %p35_p9 = scmp.ge.s32.totalorder %s5248_s18, 4   ;;  %s5946_s24 = smov %s4869_s25 }
0x17b4   : > { %s5947_s25 = smov %s4873_s26  ;;  %s5948_s26 = smov %s5260_s14 }
0x17b5   : > { %s5949_s27 = smov %s5248_s18  ;;  %37 = sbr.rel (!%p35_p9) target bundleno = 23 (0x17), region = 182 }
0x17bc   :  { %3401 = vsyncpa [#allocation3], 1 }
0x17bd   :  { %3403 = vsyncpa [#allocation3 + $0x1], 1 }
0x17be   :  { %3404 = vsyncpa [#allocation6], 1 }
0x17bf   :  { %3405 = vsyncpa [#allocation9], 1 }
0x17c0   :  { %3406 = vsyncpa [#allocation12], 1 }
0x17c1   :  { %3407 = vsyncpa [#allocation15], 1 }
0x17c2   :  { %3408 = vsyncpa [#allocation18], 1 }
0x17c3   :  { %3409 = vsyncpa [#allocation4], 1 }
0x17c4   :  { %3411 = vsyncpa [#allocation4 + $0x1], 1 }

</bundles_post_ra>
